<compile_context>
chip_gen: v5e
topology: v5e:2x2
jax: 0.10.0
libtpu: 0.0.40
codegen_flags: <defaults>
</compile_context>

<pallas_src>
import math

import jax
import jax.numpy as jnp
from jax import lax
from jax.experimental import pallas as pl
from jax.experimental.pallas import tpu as pltpu


# ---------------------------------------------------------------------------
# Fused decoder-layer kernel (single invocation; B folded inside)
# ---------------------------------------------------------------------------
def decoder_layer_kernel(tgt_ref, mem_ref,
                         wqkv1_ref, bqkv1_ref, wo1_ref, bo1_ref,
                         wqkv2_ref, bqkv2_ref, wo2_ref, bo2_ref,
                         wf1_ref, bf1_ref, wf2_ref, bf2_ref,
                         ln_ref, out_ref):
    f32, bf16 = jnp.float32, jnp.bfloat16
    B, S, D = tgt_ref.shape
    G, dh, _ = wo1_ref.shape          # G = H * B (weights pre-replicated per batch)
    H = G // B
    scale = 1.0 / math.sqrt(dh)

    # Only two dot_general patterns, both single-leading-batch-dim (MXU-friendly,
    # no explicit transposes anywhere):
    dn_bmm = (((2,), (1,)), ((0,), (0,)))   # (g,m,k) x (g,k,n) -> (g,m,n)
    dn_qkT = (((2,), (2,)), ((0,), (0,)))   # (g,q,d) x (g,k,d) -> (g,q,k)  ("k^T" on MXU)

    def rep_heads(x):                 # (B,S,D) f32 -> (G,S,D) bf16, g = h*B + b
        xb = x.astype(bf16)
        return jnp.concatenate([xb] * H, axis=0)

    def layer_norm(x, g, b):          # x (B,S,D) f32; g/b (1,D) f32
        mu = jnp.mean(x, axis=-1, keepdims=True)
        d = x - mu
        var = jnp.mean(d * d, axis=-1, keepdims=True)   # biased variance (torch LN)
        return d * jax.lax.rsqrt(var + 1e-5) * g + b

    def mha(qk_g, v_g, wqkv_ref, bqkv_ref, wo_ref, bo_ref):
        # qk_g / v_g: (G,S,D) bf16. Both call sites share the q/k input.
        q = lax.dot_general(qk_g, wqkv_ref[0], dn_bmm,
                            preferred_element_type=f32) + bqkv_ref[0]
        k = lax.dot_general(qk_g, wqkv_ref[1], dn_bmm,
                            preferred_element_type=f32) + bqkv_ref[1]
        v = lax.dot_general(v_g, wqkv_ref[2], dn_bmm,
                            preferred_element_type=f32) + bqkv_ref[2]
        s = lax.dot_general(q.astype(bf16), k.astype(bf16), dn_qkT,
                            preferred_element_type=f32) * scale      # (G,S,S)
        s = s - jnp.max(s, axis=-1, keepdims=True)
        p = jnp.exp(s)
        p = p / jnp.sum(p, axis=-1, keepdims=True)       # exact division (parity)
        o = lax.dot_general(p.astype(bf16), v.astype(bf16), dn_bmm,
                            preferred_element_type=f32)              # (G,S,dh)
        y = lax.dot_general(o.astype(bf16), wo_ref[...], dn_bmm,
                            preferred_element_type=f32)              # (G,S,D)
        # concat-heads @ Wo  ==  sum over heads of (o_h @ Wo_h)
        return jnp.sum(y.reshape(H, B, S, D), axis=0) + bo_ref[...]  # (B,S,D)

    tgt = tgt_ref[...]                                   # (B,S,D) f32
    tgt_g = rep_heads(tgt)
    mem_g = rep_heads(mem_ref[...])

    # attention_1: LayerNorm(tgt + MHA(q=tgt, k=tgt, v=tgt))
    x1 = layer_norm(tgt + mha(tgt_g, tgt_g, wqkv1_ref, bqkv1_ref, wo1_ref, bo1_ref),
                    ln_ref[0:1, :], ln_ref[1:2, :])

    # attention_2: LayerNorm(x1 + MHA(q=memory, k=memory, v=x1))  (value=x1, per module)
    x1_g = rep_heads(x1)
    x2 = layer_norm(x1 + mha(mem_g, x1_g, wqkv2_ref, bqkv2_ref, wo2_ref, bo2_ref),
                    ln_ref[2:3, :], ln_ref[3:4, :])

    # feed_forward: LayerNorm(x2 + W2 relu(W1 x2 + b1) + b2)
    h1 = lax.dot_general(x2.astype(bf16), wf1_ref[...], dn_bmm,
                         preferred_element_type=f32) + bf1_ref[...]   # (B,S,FF)
    h1 = jnp.maximum(h1, 0.0)
    ffo = lax.dot_general(h1.astype(bf16), wf2_ref[...], dn_bmm,
                          preferred_element_type=f32) + bf2_ref[...]  # (B,S,D)
    out_ref[...] = layer_norm(x2 + ffo, ln_ref[4:5, :], ln_ref[5:6, :])


# ---------------------------------------------------------------------------
# One-time parameter packing (hoisted out of the per-call path; cache the result)
# ---------------------------------------------------------------------------
def pack_params(params, B, H, dh):
    bf16 = jnp.bfloat16
    G = H * B
    D = params["wq1"].shape[1]

    def rep(w):   # (H, ...) -> (G, ...), g = h*B + b  (matches the kernel's rep_heads)
        return jnp.broadcast_to(w[:, None], (H, B) + w.shape[1:]).reshape((G,) + w.shape[1:])

    packed = {}
    for i in (1, 2):
        packed[f"wqkv{i}"] = jnp.stack(
            [rep(params[f"w{n}{i}"]) for n in ("q", "k", "v")]).astype(bf16)   # (3,G,D,dh) bf16
        packed[f"bqkv{i}"] = jnp.stack(
            [rep(params[f"b{n}{i}"][:, None, :]) for n in ("q", "k", "v")])    # (3,G,1,dh) f32
        packed[f"wo{i}"] = rep(params[f"wo{i}"].reshape(H, dh, D)).astype(bf16)  # (G,dh,D) bf16
        packed[f"bo{i}"] = params[f"bo{i}"].reshape(1, D)                        # (1,D)   f32
    # FFN weights replicated per batch element so every kernel matmul is the same
    # single-batch-dim bmm pattern.  TODO(synk): for large B/FF, drop the replication
    # and use a 2-D (B*S, D) dot instead.
    packed["wf1"] = jnp.broadcast_to(params["wf1"][None],
                                     (B,) + params["wf1"].shape).astype(bf16)    # (B,D,FF)
    packed["wf2"] = jnp.broadcast_to(params["wf2"][None],
                                     (B,) + params["wf2"].shape).astype(bf16)    # (B,FF,D)
    packed["bf1"] = params["bf1"].reshape(1, -1)                                 # (1,FF) f32
    packed["bf2"] = params["bf2"].reshape(1, -1)                                 # (1,D)  f32
    packed["ln"] = jnp.stack([params["g1"], params["be1"], params["g2"],
                              params["be2"], params["g3"], params["be3"]])       # (6,D)  f32
    return packed


def transformer_decoder_layer(tgt, memory, packed):
    B, S, D = tgt.shape
    assert memory.shape == (B, S, D), "memory must have the same (B, S, D) as tgt"

    inputs = [tgt, memory,
              packed["wqkv1"], packed["bqkv1"], packed["wo1"], packed["bo1"],
              packed["wqkv2"], packed["bqkv2"], packed["wo2"], packed["bo2"],
              packed["wf1"], packed["bf1"], packed["wf2"], packed["bf2"],
              packed["ln"]]

    def full_spec(arr):
        nd = arr.ndim
        return pl.BlockSpec(arr.shape, lambda i, nd=nd: (0,) * nd)

    return pl.pallas_call(
        decoder_layer_kernel,
        out_shape=jax.ShapeDtypeStruct((B, S, D), jnp.float32),
        grid_spec=pltpu.PrefetchScalarGridSpec(
            num_scalar_prefetch=0,
            grid=(1,),                        # single step: B folded into the kernel
            in_specs=[full_spec(a) for a in inputs],
            out_specs=pl.BlockSpec((B, S, D), lambda i: (0, 0, 0)),
        ),
        compiler_params=pltpu.CompilerParams(
            dimension_semantics=("arbitrary",),
            vmem_limit_bytes=32 * 1024 * 1024),
    )(*inputs)


# ---------------------------------------------------------------------------
# Deterministic parameter init (shapes follow the PyTorch __init__)
# ---------------------------------------------------------------------------
def init_params(key, D, H, dh, FF):
    ks = iter(jax.random.split(key, 24))

    def lin(fan_in, shape):
        bound = 1.0 / math.sqrt(fan_in)
        return jax.random.uniform(next(ks), shape, jnp.float32, -bound, bound)

    params = {}
    for i in (1, 2):                       # attention_1 / attention_2
        params[f"wq{i}"] = lin(D, (H, D, dh))
        params[f"wk{i}"] = lin(D, (H, D, dh))
        params[f"wv{i}"] = lin(D, (H, D, dh))
        params[f"bq{i}"] = lin(D, (H, dh))
        params[f"bk{i}"] = lin(D, (H, dh))
        params[f"bv{i}"] = lin(D, (H, dh))
        params[f"wo{i}"] = lin(H * dh, (H * dh, D))   # nn.Linear(H*dv, D)
        params[f"bo{i}"] = lin(H * dh, (D,))
        params[f"g{i}"] = jnp.ones((D,), jnp.float32)     # LayerNorm weight
        params[f"be{i}"] = jnp.zeros((D,), jnp.float32)   # LayerNorm bias
    params["wf1"] = lin(D, (D, FF))
    params["bf1"] = lin(D, (FF,))
    params["wf2"] = lin(FF, (FF, D))
    params["bf2"] = lin(FF, (D,))
    params["g3"] = jnp.ones((D,), jnp.float32)
    params["be3"] = jnp.zeros((D,), jnp.float32)
    return params


# ---------------------------------------------------------------------------
# Independent pure-JAX f32 reference (per-head, mirrors the PyTorch module;
# does NOT share the kernel's helpers or packed layout).
# ---------------------------------------------------------------------------
def reference(tgt, memory, params, H):
    def layer_norm(x, g, b, eps=1e-5):
        mu = x.mean(-1, keepdims=True)
        var = ((x - mu) ** 2).mean(-1, keepdims=True)
        return (x - mu) / jnp.sqrt(var + eps) * g + b

    def mha(q_in, k_in, v_in, i):
        heads = []
        for h in range(H):
            q = q_in @ params[f"wq{i}"][h] + params[f"bq{i}"][h]
            k = k_in @ params[f"wk{i}"][h] + params[f"bk{i}"][h]
            v = v_in @ params[f"wv{i}"][h] + params[f"bv{i}"][h]
            att = jax.nn.softmax(q @ k.T / (q.shape[-1] ** 0.5), axis=-1)
            heads.append(att @ v)
        cat = jnp.concatenate(heads, axis=-1)
        return cat @ params[f"wo{i}"] + params[f"bo{i}"]

    def single(t, m):
        x1 = layer_norm(t + mha(t, t, t, 1), params["g1"], params["be1"])
        x2 = layer_norm(x1 + mha(m, m, x1, 2), params["g2"], params["be2"])
        hmid = jnp.maximum(x2 @ params["wf1"] + params["bf1"], 0.0)
        ffo = hmid @ params["wf2"] + params["bf2"]
        return layer_norm(x2 + ffo, params["g3"], params["be3"])

    return jax.vmap(single)(tgt, memory)


if __name__ == "__main__":
    # Small shapes consistent with the module: dim_model=32, num_heads=4,
    # dim_feedforward=64  ->  dim_q = dim_k = dim_v = 32 // 4 = 8.
    B, S, D, H, FF = 2, 8, 32, 4, 64
    dh = D // H

    key = jax.random.PRNGKey(0)
    k_tgt, k_mem, k_par = jax.random.split(key, 3)
    tgt = jax.random.normal(k_tgt, (B, S, D), jnp.float32)
    memory = jax.random.normal(k_mem, (B, S, D), jnp.float32)
    params = init_params(k_par, D, H, dh, FF)

    packed = pack_params(params, B, H, dh)          # packed once and cached
    fwd = jax.jit(transformer_decoder_layer)
    out = jax.block_until_ready(fwd(tgt, memory, packed))

    ref = reference(tgt, memory, params, H)
    assert out.shape == (B, S, D)
    # Tolerance accounts for bf16 MXU operands (f32 accumulation, f32 LN/softmax);
    # real structural bugs produce O(1) errors, far above this threshold.
    max_err = float(jnp.max(jnp.abs(out - ref)))
    assert bool(jnp.allclose(out, ref, atol=5e-2, rtol=5e-2)), (
        "max abs err = %f" % max_err)
    print("KERNEL_OK")
</pallas_src>

<mosaic_0001>
module attributes {stable_mosaic.version = 11 : i64} {
  func.func @decoder_layer_kernel(%arg0: i32, %arg1: memref<2x8x32xf32, #tpu.memory_space<vmem>>, %arg2: memref<2x8x32xf32, #tpu.memory_space<vmem>>, %arg3: memref<3x8x32x8xbf16, #tpu.memory_space<vmem>>, %arg4: memref<3x8x1x8xf32, #tpu.memory_space<vmem>>, %arg5: memref<8x8x32xbf16, #tpu.memory_space<vmem>>, %arg6: memref<1x32xf32, #tpu.memory_space<vmem>>, %arg7: memref<3x8x32x8xbf16, #tpu.memory_space<vmem>>, %arg8: memref<3x8x1x8xf32, #tpu.memory_space<vmem>>, %arg9: memref<8x8x32xbf16, #tpu.memory_space<vmem>>, %arg10: memref<1x32xf32, #tpu.memory_space<vmem>>, %arg11: memref<2x32x64xbf16, #tpu.memory_space<vmem>>, %arg12: memref<1x64xf32, #tpu.memory_space<vmem>>, %arg13: memref<2x64x32xbf16, #tpu.memory_space<vmem>>, %arg14: memref<1x32xf32, #tpu.memory_space<vmem>>, %arg15: memref<6x32xf32, #tpu.memory_space<vmem>>, %arg16: memref<2x8x32xf32, #tpu.memory_space<vmem>>) attributes {dimension_semantics = [#tpu.dimension_semantics<arbitrary>], iteration_bounds = array<i64: 1>, scalar_prefetch = 0 : i64, scratch_operands = 0 : i64, tpu.core_type = #tpu.core_type<tc>, window_params = [{pipeline_mode = #tpu.pipeline_mode<synchronous>, transform_indices = @transform_0, window_bounds = array<i64: 2, 8, 32>}, {pipeline_mode = #tpu.pipeline_mode<synchronous>, transform_indices = @transform_1, window_bounds = array<i64: 2, 8, 32>}, {pipeline_mode = #tpu.pipeline_mode<synchronous>, transform_indices = @transform_2, window_bounds = array<i64: 3, 8, 32, 8>}, {pipeline_mode = #tpu.pipeline_mode<synchronous>, transform_indices = @transform_3, window_bounds = array<i64: 3, 8, 1, 8>}, {pipeline_mode = #tpu.pipeline_mode<synchronous>, transform_indices = @transform_4, window_bounds = array<i64: 8, 8, 32>}, {pipeline_mode = #tpu.pipeline_mode<synchronous>, transform_indices = @transform_5, window_bounds = array<i64: 1, 32>}, {pipeline_mode = #tpu.pipeline_mode<synchronous>, transform_indices = @transform_6, window_bounds = array<i64: 3, 8, 32, 8>}, {pipeline_mode = #tpu.pipeline_mode<synchronous>, transform_indices = @transform_7, window_bounds = array<i64: 3, 8, 1, 8>}, {pipeline_mode = #tpu.pipeline_mode<synchronous>, transform_indices = @transform_8, window_bounds = array<i64: 8, 8, 32>}, {pipeline_mode = #tpu.pipeline_mode<synchronous>, transform_indices = @transform_9, window_bounds = array<i64: 1, 32>}, {pipeline_mode = #tpu.pipeline_mode<synchronous>, transform_indices = @transform_10, window_bounds = array<i64: 2, 32, 64>}, {pipeline_mode = #tpu.pipeline_mode<synchronous>, transform_indices = @transform_11, window_bounds = array<i64: 1, 64>}, {pipeline_mode = #tpu.pipeline_mode<synchronous>, transform_indices = @transform_12, window_bounds = array<i64: 2, 64, 32>}, {pipeline_mode = #tpu.pipeline_mode<synchronous>, transform_indices = @transform_13, window_bounds = array<i64: 1, 32>}, {pipeline_mode = #tpu.pipeline_mode<synchronous>, transform_indices = @transform_14, window_bounds = array<i64: 6, 32>}, {pipeline_mode = #tpu.pipeline_mode<synchronous>, transform_indices = @transform_15, window_bounds = array<i64: 2, 8, 32>}]} {
    %c0 = arith.constant 0 : index
    %c0_0 = arith.constant 0 : index
    %c0_1 = arith.constant 0 : index
    %0 = vector.load %arg1[%c0, %c0_0, %c0_1] : memref<2x8x32xf32, #tpu.memory_space<vmem>>, vector<2x8x32xf32>
    %1 = arith.truncf %0 : vector<2x8x32xf32> to vector<2x8x32xbf16>
    %2 = tpu.concatenate %1, %1, %1, %1 in 0 : vector<2x8x32xbf16>, vector<2x8x32xbf16>, vector<2x8x32xbf16>, vector<2x8x32xbf16> -> vector<8x8x32xbf16>
    %c0_2 = arith.constant 0 : index
    %c0_3 = arith.constant 0 : index
    %c0_4 = arith.constant 0 : index
    %3 = vector.load %arg2[%c0_2, %c0_3, %c0_4] : memref<2x8x32xf32, #tpu.memory_space<vmem>>, vector<2x8x32xf32>
    %4 = arith.truncf %3 : vector<2x8x32xf32> to vector<2x8x32xbf16>
    %5 = tpu.concatenate %4, %4, %4, %4 in 0 : vector<2x8x32xbf16>, vector<2x8x32xbf16>, vector<2x8x32xbf16>, vector<2x8x32xbf16> -> vector<8x8x32xbf16>
    %c0_5 = arith.constant 0 : index
    %c0_6 = arith.constant 0 : index
    %c0_7 = arith.constant 0 : index
    %c0_8 = arith.constant 0 : index
    %6 = vector.load %arg3[%c0_5, %c0_6, %c0_7, %c0_8] : memref<3x8x32x8xbf16, #tpu.memory_space<vmem>>, vector<1x8x32x8xbf16>
    %7 = vector.shape_cast %6 : vector<1x8x32x8xbf16> to vector<8x32x8xbf16>
    %cst = arith.constant dense<0.000000e+00> : vector<8x8x8xf32>
    %8 = tpu.matmul %2, %7, %cst {dimension_numbers = #tpu.dot_dimension_numbers<[2], [1], [1], [2], [0, 0, 0, 1, 1, 2], [0], [0]>} : vector<8x8x32xbf16>, vector<8x32x8xbf16>, vector<8x8x8xf32> -> vector<8x8x8xf32>
    %c0_9 = arith.constant 0 : index
    %c0_10 = arith.constant 0 : index
    %c0_11 = arith.constant 0 : index
    %c0_12 = arith.constant 0 : index
    %9 = vector.load %arg4[%c0_9, %c0_10, %c0_11, %c0_12] : memref<3x8x1x8xf32, #tpu.memory_space<vmem>>, vector<1x8x1x8xf32>
    %10 = vector.shape_cast %9 : vector<1x8x1x8xf32> to vector<8x1x8xf32>
    %11 = vector.broadcast %10 : vector<8x1x8xf32> to vector<8x8x8xf32>
    %12 = arith.addf %8, %11 : vector<8x8x8xf32>
    %c1 = arith.constant 1 : index
    %c0_13 = arith.constant 0 : index
    %c0_14 = arith.constant 0 : index
    %c0_15 = arith.constant 0 : index
    %13 = vector.load %arg3[%c1, %c0_13, %c0_14, %c0_15] : memref<3x8x32x8xbf16, #tpu.memory_space<vmem>>, vector<1x8x32x8xbf16>
    %14 = vector.shape_cast %13 : vector<1x8x32x8xbf16> to vector<8x32x8xbf16>
    %cst_16 = arith.constant dense<0.000000e+00> : vector<8x8x8xf32>
    %15 = tpu.matmul %2, %14, %cst_16 {dimension_numbers = #tpu.dot_dimension_numbers<[2], [1], [1], [2], [0, 0, 0, 1, 1, 2], [0], [0]>} : vector<8x8x32xbf16>, vector<8x32x8xbf16>, vector<8x8x8xf32> -> vector<8x8x8xf32>
    %c1_17 = arith.constant 1 : index
    %c0_18 = arith.constant 0 : index
    %c0_19 = arith.constant 0 : index
    %c0_20 = arith.constant 0 : index
    %16 = vector.load %arg4[%c1_17, %c0_18, %c0_19, %c0_20] : memref<3x8x1x8xf32, #tpu.memory_space<vmem>>, vector<1x8x1x8xf32>
    %17 = vector.shape_cast %16 : vector<1x8x1x8xf32> to vector<8x1x8xf32>
    %18 = vector.broadcast %17 : vector<8x1x8xf32> to vector<8x8x8xf32>
    %19 = arith.addf %15, %18 : vector<8x8x8xf32>
    %c2 = arith.constant 2 : index
    %c0_21 = arith.constant 0 : index
    %c0_22 = arith.constant 0 : index
    %c0_23 = arith.constant 0 : index
    %20 = vector.load %arg3[%c2, %c0_21, %c0_22, %c0_23] : memref<3x8x32x8xbf16, #tpu.memory_space<vmem>>, vector<1x8x32x8xbf16>
    %21 = vector.shape_cast %20 : vector<1x8x32x8xbf16> to vector<8x32x8xbf16>
    %cst_24 = arith.constant dense<0.000000e+00> : vector<8x8x8xf32>
    %22 = tpu.matmul %2, %21, %cst_24 {dimension_numbers = #tpu.dot_dimension_numbers<[2], [1], [1], [2], [0, 0, 0, 1, 1, 2], [0], [0]>} : vector<8x8x32xbf16>, vector<8x32x8xbf16>, vector<8x8x8xf32> -> vector<8x8x8xf32>
    %c2_25 = arith.constant 2 : index
    %c0_26 = arith.constant 0 : index
    %c0_27 = arith.constant 0 : index
    %c0_28 = arith.constant 0 : index
    %23 = vector.load %arg4[%c2_25, %c0_26, %c0_27, %c0_28] : memref<3x8x1x8xf32, #tpu.memory_space<vmem>>, vector<1x8x1x8xf32>
    %24 = vector.shape_cast %23 : vector<1x8x1x8xf32> to vector<8x1x8xf32>
    %25 = vector.broadcast %24 : vector<8x1x8xf32> to vector<8x8x8xf32>
    %26 = arith.addf %22, %25 : vector<8x8x8xf32>
    %27 = arith.truncf %12 : vector<8x8x8xf32> to vector<8x8x8xbf16>
    %28 = arith.truncf %19 : vector<8x8x8xf32> to vector<8x8x8xbf16>
    %cst_29 = arith.constant dense<0.000000e+00> : vector<8x8x8xf32>
    %29 = tpu.matmul %27, %28, %cst_29 {dimension_numbers = #tpu.dot_dimension_numbers<[2], [2], [1], [1], [0, 0, 0, 1, 1, 1], [0], [0]>} : vector<8x8x8xbf16>, vector<8x8x8xbf16>, vector<8x8x8xf32> -> vector<8x8x8xf32>
    %cst_30 = arith.constant 0.353553385 : f32
    %30 = vector.broadcast %cst_30 : f32 to vector<8x8x8xf32>
    %31 = arith.mulf %29, %30 : vector<8x8x8xf32>
    %cst_31 = arith.constant dense<0xFF800000> : vector<8x8xf32>
    %32 = vector.multi_reduction <maximumf>, %31, %cst_31 [2] : vector<8x8x8xf32> to vector<8x8xf32>
    %33 = vector.shape_cast %32 : vector<8x8xf32> to vector<8x8x1xf32>
    %34 = vector.broadcast %33 : vector<8x8x1xf32> to vector<8x8x8xf32>
    %35 = arith.subf %31, %34 : vector<8x8x8xf32>
    %36 = math.exp %35 : vector<8x8x8xf32>
    %cst_32 = arith.constant dense<0.000000e+00> : vector<8x8xf32>
    %37 = vector.multi_reduction <add>, %36, %cst_32 [2] : vector<8x8x8xf32> to vector<8x8xf32>
    %38 = vector.shape_cast %37 : vector<8x8xf32> to vector<8x8x1xf32>
    %39 = vector.broadcast %38 : vector<8x8x1xf32> to vector<8x8x8xf32>
    %40 = arith.divf %36, %39 : vector<8x8x8xf32>
    %41 = arith.truncf %40 : vector<8x8x8xf32> to vector<8x8x8xbf16>
    %42 = arith.truncf %26 : vector<8x8x8xf32> to vector<8x8x8xbf16>
    %cst_33 = arith.constant dense<0.000000e+00> : vector<8x8x8xf32>
    %43 = tpu.matmul %41, %42, %cst_33 {dimension_numbers = #tpu.dot_dimension_numbers<[2], [1], [1], [2], [0, 0, 0, 1, 1, 2], [0], [0]>} : vector<8x8x8xbf16>, vector<8x8x8xbf16>, vector<8x8x8xf32> -> vector<8x8x8xf32>
    %44 = arith.truncf %43 : vector<8x8x8xf32> to vector<8x8x8xbf16>
    %c0_34 = arith.constant 0 : index
    %c0_35 = arith.constant 0 : index
    %c0_36 = arith.constant 0 : index
    %45 = vector.load %arg5[%c0_34, %c0_35, %c0_36] : memref<8x8x32xbf16, #tpu.memory_space<vmem>>, vector<8x8x32xbf16>
    %cst_37 = arith.constant dense<0.000000e+00> : vector<8x8x32xf32>
    %46 = tpu.matmul %44, %45, %cst_37 {dimension_numbers = #tpu.dot_dimension_numbers<[2], [1], [1], [2], [0, 0, 0, 1, 1, 2], [0], [0]>} : vector<8x8x8xbf16>, vector<8x8x32xbf16>, vector<8x8x32xf32> -> vector<8x8x32xf32>
    %47 = vector.shape_cast %46 : vector<8x8x32xf32> to vector<4x2x8x32xf32>
    %cst_38 = arith.constant dense<0.000000e+00> : vector<2x8x32xf32>
    %48 = vector.multi_reduction <add>, %47, %cst_38 [0] : vector<4x2x8x32xf32> to vector<2x8x32xf32>
    %c0_39 = arith.constant 0 : index
    %c0_40 = arith.constant 0 : index
    %49 = vector.load %arg6[%c0_39, %c0_40] : memref<1x32xf32, #tpu.memory_space<vmem>>, vector<1x32xf32>
    %50 = vector.shape_cast %49 : vector<1x32xf32> to vector<1x1x32xf32>
    %51 = vector.broadcast %50 : vector<1x1x32xf32> to vector<2x8x32xf32>
    %52 = arith.addf %48, %51 : vector<2x8x32xf32>
    %53 = arith.addf %0, %52 : vector<2x8x32xf32>
    %c0_41 = arith.constant 0 : index
    %c0_42 = arith.constant 0 : index
    %54 = vector.load %arg15[%c0_41, %c0_42] : memref<6x32xf32, #tpu.memory_space<vmem>>, vector<1x32xf32>
    %c1_43 = arith.constant 1 : index
    %c0_44 = arith.constant 0 : index
    %55 = vector.load %arg15[%c1_43, %c0_44] : memref<6x32xf32, #tpu.memory_space<vmem>>, vector<1x32xf32>
    %cst_45 = arith.constant dense<0.000000e+00> : vector<2x8xf32>
    %56 = vector.multi_reduction <add>, %53, %cst_45 [2] : vector<2x8x32xf32> to vector<2x8xf32>
    %57 = vector.shape_cast %56 : vector<2x8xf32> to vector<2x8x1xf32>
    %cst_46 = arith.constant 3.200000e+01 : f32
    %58 = vector.broadcast %cst_46 : f32 to vector<2x8x1xf32>
    %59 = arith.divf %57, %58 : vector<2x8x1xf32>
    %60 = vector.broadcast %59 : vector<2x8x1xf32> to vector<2x8x32xf32>
    %61 = arith.subf %53, %60 : vector<2x8x32xf32>
    %62 = arith.mulf %61, %61 : vector<2x8x32xf32>
    %cst_47 = arith.constant dense<0.000000e+00> : vector<2x8xf32>
    %63 = vector.multi_reduction <add>, %62, %cst_47 [2] : vector<2x8x32xf32> to vector<2x8xf32>
    %64 = vector.shape_cast %63 : vector<2x8xf32> to vector<2x8x1xf32>
    %cst_48 = arith.constant 3.200000e+01 : f32
    %65 = vector.broadcast %cst_48 : f32 to vector<2x8x1xf32>
    %66 = arith.divf %64, %65 : vector<2x8x1xf32>
    %cst_49 = arith.constant 9.99999974E-6 : f32
    %67 = vector.broadcast %cst_49 : f32 to vector<2x8x1xf32>
    %68 = arith.addf %66, %67 : vector<2x8x1xf32>
    %69 = math.rsqrt %68 : vector<2x8x1xf32>
    %70 = vector.broadcast %69 : vector<2x8x1xf32> to vector<2x8x32xf32>
    %71 = arith.mulf %61, %70 : vector<2x8x32xf32>
    %72 = vector.shape_cast %54 : vector<1x32xf32> to vector<1x1x32xf32>
    %73 = vector.broadcast %72 : vector<1x1x32xf32> to vector<2x8x32xf32>
    %74 = arith.mulf %71, %73 : vector<2x8x32xf32>
    %75 = vector.shape_cast %55 : vector<1x32xf32> to vector<1x1x32xf32>
    %76 = vector.broadcast %75 : vector<1x1x32xf32> to vector<2x8x32xf32>
    %77 = arith.addf %74, %76 : vector<2x8x32xf32>
    %78 = arith.truncf %77 : vector<2x8x32xf32> to vector<2x8x32xbf16>
    %79 = tpu.concatenate %78, %78, %78, %78 in 0 : vector<2x8x32xbf16>, vector<2x8x32xbf16>, vector<2x8x32xbf16>, vector<2x8x32xbf16> -> vector<8x8x32xbf16>
    %c0_50 = arith.constant 0 : index
    %c0_51 = arith.constant 0 : index
    %c0_52 = arith.constant 0 : index
    %c0_53 = arith.constant 0 : index
    %80 = vector.load %arg7[%c0_50, %c0_51, %c0_52, %c0_53] : memref<3x8x32x8xbf16, #tpu.memory_space<vmem>>, vector<1x8x32x8xbf16>
    %81 = vector.shape_cast %80 : vector<1x8x32x8xbf16> to vector<8x32x8xbf16>
    %cst_54 = arith.constant dense<0.000000e+00> : vector<8x8x8xf32>
    %82 = tpu.matmul %5, %81, %cst_54 {dimension_numbers = #tpu.dot_dimension_numbers<[2], [1], [1], [2], [0, 0, 0, 1, 1, 2], [0], [0]>} : vector<8x8x32xbf16>, vector<8x32x8xbf16>, vector<8x8x8xf32> -> vector<8x8x8xf32>
    %c0_55 = arith.constant 0 : index
    %c0_56 = arith.constant 0 : index
    %c0_57 = arith.constant 0 : index
    %c0_58 = arith.constant 0 : index
    %83 = vector.load %arg8[%c0_55, %c0_56, %c0_57, %c0_58] : memref<3x8x1x8xf32, #tpu.memory_space<vmem>>, vector<1x8x1x8xf32>
    %84 = vector.shape_cast %83 : vector<1x8x1x8xf32> to vector<8x1x8xf32>
    %85 = vector.broadcast %84 : vector<8x1x8xf32> to vector<8x8x8xf32>
    %86 = arith.addf %82, %85 : vector<8x8x8xf32>
    %c1_59 = arith.constant 1 : index
    %c0_60 = arith.constant 0 : index
    %c0_61 = arith.constant 0 : index
    %c0_62 = arith.constant 0 : index
    %87 = vector.load %arg7[%c1_59, %c0_60, %c0_61, %c0_62] : memref<3x8x32x8xbf16, #tpu.memory_space<vmem>>, vector<1x8x32x8xbf16>
    %88 = vector.shape_cast %87 : vector<1x8x32x8xbf16> to vector<8x32x8xbf16>
    %cst_63 = arith.constant dense<0.000000e+00> : vector<8x8x8xf32>
    %89 = tpu.matmul %5, %88, %cst_63 {dimension_numbers = #tpu.dot_dimension_numbers<[2], [1], [1], [2], [0, 0, 0, 1, 1, 2], [0], [0]>} : vector<8x8x32xbf16>, vector<8x32x8xbf16>, vector<8x8x8xf32> -> vector<8x8x8xf32>
    %c1_64 = arith.constant 1 : index
    %c0_65 = arith.constant 0 : index
    %c0_66 = arith.constant 0 : index
    %c0_67 = arith.constant 0 : index
    %90 = vector.load %arg8[%c1_64, %c0_65, %c0_66, %c0_67] : memref<3x8x1x8xf32, #tpu.memory_space<vmem>>, vector<1x8x1x8xf32>
    %91 = vector.shape_cast %90 : vector<1x8x1x8xf32> to vector<8x1x8xf32>
    %92 = vector.broadcast %91 : vector<8x1x8xf32> to vector<8x8x8xf32>
    %93 = arith.addf %89, %92 : vector<8x8x8xf32>
    %c2_68 = arith.constant 2 : index
    %c0_69 = arith.constant 0 : index
    %c0_70 = arith.constant 0 : index
    %c0_71 = arith.constant 0 : index
    %94 = vector.load %arg7[%c2_68, %c0_69, %c0_70, %c0_71] : memref<3x8x32x8xbf16, #tpu.memory_space<vmem>>, vector<1x8x32x8xbf16>
    %95 = vector.shape_cast %94 : vector<1x8x32x8xbf16> to vector<8x32x8xbf16>
    %cst_72 = arith.constant dense<0.000000e+00> : vector<8x8x8xf32>
    %96 = tpu.matmul %79, %95, %cst_72 {dimension_numbers = #tpu.dot_dimension_numbers<[2], [1], [1], [2], [0, 0, 0, 1, 1, 2], [0], [0]>} : vector<8x8x32xbf16>, vector<8x32x8xbf16>, vector<8x8x8xf32> -> vector<8x8x8xf32>
    %c2_73 = arith.constant 2 : index
    %c0_74 = arith.constant 0 : index
    %c0_75 = arith.constant 0 : index
    %c0_76 = arith.constant 0 : index
    %97 = vector.load %arg8[%c2_73, %c0_74, %c0_75, %c0_76] : memref<3x8x1x8xf32, #tpu.memory_space<vmem>>, vector<1x8x1x8xf32>
    %98 = vector.shape_cast %97 : vector<1x8x1x8xf32> to vector<8x1x8xf32>
    %99 = vector.broadcast %98 : vector<8x1x8xf32> to vector<8x8x8xf32>
    %100 = arith.addf %96, %99 : vector<8x8x8xf32>
    %101 = arith.truncf %86 : vector<8x8x8xf32> to vector<8x8x8xbf16>
    %102 = arith.truncf %93 : vector<8x8x8xf32> to vector<8x8x8xbf16>
    %cst_77 = arith.constant dense<0.000000e+00> : vector<8x8x8xf32>
    %103 = tpu.matmul %101, %102, %cst_77 {dimension_numbers = #tpu.dot_dimension_numbers<[2], [2], [1], [1], [0, 0, 0, 1, 1, 1], [0], [0]>} : vector<8x8x8xbf16>, vector<8x8x8xbf16>, vector<8x8x8xf32> -> vector<8x8x8xf32>
    %cst_78 = arith.constant 0.353553385 : f32
    %104 = vector.broadcast %cst_78 : f32 to vector<8x8x8xf32>
    %105 = arith.mulf %103, %104 : vector<8x8x8xf32>
    %cst_79 = arith.constant dense<0xFF800000> : vector<8x8xf32>
    %106 = vector.multi_reduction <maximumf>, %105, %cst_79 [2] : vector<8x8x8xf32> to vector<8x8xf32>
    %107 = vector.shape_cast %106 : vector<8x8xf32> to vector<8x8x1xf32>
    %108 = vector.broadcast %107 : vector<8x8x1xf32> to vector<8x8x8xf32>
    %109 = arith.subf %105, %108 : vector<8x8x8xf32>
    %110 = math.exp %109 : vector<8x8x8xf32>
    %cst_80 = arith.constant dense<0.000000e+00> : vector<8x8xf32>
    %111 = vector.multi_reduction <add>, %110, %cst_80 [2] : vector<8x8x8xf32> to vector<8x8xf32>
    %112 = vector.shape_cast %111 : vector<8x8xf32> to vector<8x8x1xf32>
    %113 = vector.broadcast %112 : vector<8x8x1xf32> to vector<8x8x8xf32>
    %114 = arith.divf %110, %113 : vector<8x8x8xf32>
    %115 = arith.truncf %114 : vector<8x8x8xf32> to vector<8x8x8xbf16>
    %116 = arith.truncf %100 : vector<8x8x8xf32> to vector<8x8x8xbf16>
    %cst_81 = arith.constant dense<0.000000e+00> : vector<8x8x8xf32>
    %117 = tpu.matmul %115, %116, %cst_81 {dimension_numbers = #tpu.dot_dimension_numbers<[2], [1], [1], [2], [0, 0, 0, 1, 1, 2], [0], [0]>} : vector<8x8x8xbf16>, vector<8x8x8xbf16>, vector<8x8x8xf32> -> vector<8x8x8xf32>
    %118 = arith.truncf %117 : vector<8x8x8xf32> to vector<8x8x8xbf16>
    %c0_82 = arith.constant 0 : index
    %c0_83 = arith.constant 0 : index
    %c0_84 = arith.constant 0 : index
    %119 = vector.load %arg9[%c0_82, %c0_83, %c0_84] : memref<8x8x32xbf16, #tpu.memory_space<vmem>>, vector<8x8x32xbf16>
    %cst_85 = arith.constant dense<0.000000e+00> : vector<8x8x32xf32>
    %120 = tpu.matmul %118, %119, %cst_85 {dimension_numbers = #tpu.dot_dimension_numbers<[2], [1], [1], [2], [0, 0, 0, 1, 1, 2], [0], [0]>} : vector<8x8x8xbf16>, vector<8x8x32xbf16>, vector<8x8x32xf32> -> vector<8x8x32xf32>
    %121 = vector.shape_cast %120 : vector<8x8x32xf32> to vector<4x2x8x32xf32>
    %cst_86 = arith.constant dense<0.000000e+00> : vector<2x8x32xf32>
    %122 = vector.multi_reduction <add>, %121, %cst_86 [0] : vector<4x2x8x32xf32> to vector<2x8x32xf32>
    %c0_87 = arith.constant 0 : index
    %c0_88 = arith.constant 0 : index
    %123 = vector.load %arg10[%c0_87, %c0_88] : memref<1x32xf32, #tpu.memory_space<vmem>>, vector<1x32xf32>
    %124 = vector.shape_cast %123 : vector<1x32xf32> to vector<1x1x32xf32>
    %125 = vector.broadcast %124 : vector<1x1x32xf32> to vector<2x8x32xf32>
    %126 = arith.addf %122, %125 : vector<2x8x32xf32>
    %127 = arith.addf %77, %126 : vector<2x8x32xf32>
    %c2_89 = arith.constant 2 : index
    %c0_90 = arith.constant 0 : index
    %128 = vector.load %arg15[%c2_89, %c0_90] : memref<6x32xf32, #tpu.memory_space<vmem>>, vector<1x32xf32>
    %c3 = arith.constant 3 : index
    %c0_91 = arith.constant 0 : index
    %129 = vector.load %arg15[%c3, %c0_91] : memref<6x32xf32, #tpu.memory_space<vmem>>, vector<1x32xf32>
    %cst_92 = arith.constant dense<0.000000e+00> : vector<2x8xf32>
    %130 = vector.multi_reduction <add>, %127, %cst_92 [2] : vector<2x8x32xf32> to vector<2x8xf32>
    %131 = vector.shape_cast %130 : vector<2x8xf32> to vector<2x8x1xf32>
    %cst_93 = arith.constant 3.200000e+01 : f32
    %132 = vector.broadcast %cst_93 : f32 to vector<2x8x1xf32>
    %133 = arith.divf %131, %132 : vector<2x8x1xf32>
    %134 = vector.broadcast %133 : vector<2x8x1xf32> to vector<2x8x32xf32>
    %135 = arith.subf %127, %134 : vector<2x8x32xf32>
    %136 = arith.mulf %135, %135 : vector<2x8x32xf32>
    %cst_94 = arith.constant dense<0.000000e+00> : vector<2x8xf32>
    %137 = vector.multi_reduction <add>, %136, %cst_94 [2] : vector<2x8x32xf32> to vector<2x8xf32>
    %138 = vector.shape_cast %137 : vector<2x8xf32> to vector<2x8x1xf32>
    %cst_95 = arith.constant 3.200000e+01 : f32
    %139 = vector.broadcast %cst_95 : f32 to vector<2x8x1xf32>
    %140 = arith.divf %138, %139 : vector<2x8x1xf32>
    %cst_96 = arith.constant 9.99999974E-6 : f32
    %141 = vector.broadcast %cst_96 : f32 to vector<2x8x1xf32>
    %142 = arith.addf %140, %141 : vector<2x8x1xf32>
    %143 = math.rsqrt %142 : vector<2x8x1xf32>
    %144 = vector.broadcast %143 : vector<2x8x1xf32> to vector<2x8x32xf32>
    %145 = arith.mulf %135, %144 : vector<2x8x32xf32>
    %146 = vector.shape_cast %128 : vector<1x32xf32> to vector<1x1x32xf32>
    %147 = vector.broadcast %146 : vector<1x1x32xf32> to vector<2x8x32xf32>
    %148 = arith.mulf %145, %147 : vector<2x8x32xf32>
    %149 = vector.shape_cast %129 : vector<1x32xf32> to vector<1x1x32xf32>
    %150 = vector.broadcast %149 : vector<1x1x32xf32> to vector<2x8x32xf32>
    %151 = arith.addf %148, %150 : vector<2x8x32xf32>
    %152 = arith.truncf %151 : vector<2x8x32xf32> to vector<2x8x32xbf16>
    %c0_97 = arith.constant 0 : index
    %c0_98 = arith.constant 0 : index
    %c0_99 = arith.constant 0 : index
    %153 = vector.load %arg11[%c0_97, %c0_98, %c0_99] : memref<2x32x64xbf16, #tpu.memory_space<vmem>>, vector<2x32x64xbf16>
    %cst_100 = arith.constant dense<0.000000e+00> : vector<2x8x64xf32>
    %154 = tpu.matmul %152, %153, %cst_100 {dimension_numbers = #tpu.dot_dimension_numbers<[2], [1], [1], [2], [0, 0, 0, 1, 1, 2], [0], [0]>} : vector<2x8x32xbf16>, vector<2x32x64xbf16>, vector<2x8x64xf32> -> vector<2x8x64xf32>
    %c0_101 = arith.constant 0 : index
    %c0_102 = arith.constant 0 : index
    %155 = vector.load %arg12[%c0_101, %c0_102] : memref<1x64xf32, #tpu.memory_space<vmem>>, vector<1x64xf32>
    %156 = vector.shape_cast %155 : vector<1x64xf32> to vector<1x1x64xf32>
    %157 = vector.broadcast %156 : vector<1x1x64xf32> to vector<2x8x64xf32>
    %158 = arith.addf %154, %157 : vector<2x8x64xf32>
    %cst_103 = arith.constant 0.000000e+00 : f32
    %159 = vector.broadcast %cst_103 : f32 to vector<2x8x64xf32>
    %160 = arith.maximumf %158, %159 : vector<2x8x64xf32>
    %161 = arith.truncf %160 : vector<2x8x64xf32> to vector<2x8x64xbf16>
    %c0_104 = arith.constant 0 : index
    %c0_105 = arith.constant 0 : index
    %c0_106 = arith.constant 0 : index
    %162 = vector.load %arg13[%c0_104, %c0_105, %c0_106] : memref<2x64x32xbf16, #tpu.memory_space<vmem>>, vector<2x64x32xbf16>
    %cst_107 = arith.constant dense<0.000000e+00> : vector<2x8x32xf32>
    %163 = tpu.matmul %161, %162, %cst_107 {dimension_numbers = #tpu.dot_dimension_numbers<[2], [1], [1], [2], [0, 0, 0, 1, 1, 2], [0], [0]>} : vector<2x8x64xbf16>, vector<2x64x32xbf16>, vector<2x8x32xf32> -> vector<2x8x32xf32>
    %c0_108 = arith.constant 0 : index
    %c0_109 = arith.constant 0 : index
    %164 = vector.load %arg14[%c0_108, %c0_109] : memref<1x32xf32, #tpu.memory_space<vmem>>, vector<1x32xf32>
    %165 = vector.shape_cast %164 : vector<1x32xf32> to vector<1x1x32xf32>
    %166 = vector.broadcast %165 : vector<1x1x32xf32> to vector<2x8x32xf32>
    %167 = arith.addf %163, %166 : vector<2x8x32xf32>
    %168 = arith.addf %151, %167 : vector<2x8x32xf32>
    %c4 = arith.constant 4 : index
    %c0_110 = arith.constant 0 : index
    %169 = vector.load %arg15[%c4, %c0_110] : memref<6x32xf32, #tpu.memory_space<vmem>>, vector<1x32xf32>
    %c5 = arith.constant 5 : index
    %c0_111 = arith.constant 0 : index
    %170 = vector.load %arg15[%c5, %c0_111] : memref<6x32xf32, #tpu.memory_space<vmem>>, vector<1x32xf32>
    %cst_112 = arith.constant dense<0.000000e+00> : vector<2x8xf32>
    %171 = vector.multi_reduction <add>, %168, %cst_112 [2] : vector<2x8x32xf32> to vector<2x8xf32>
    %172 = vector.shape_cast %171 : vector<2x8xf32> to vector<2x8x1xf32>
    %cst_113 = arith.constant 3.200000e+01 : f32
    %173 = vector.broadcast %cst_113 : f32 to vector<2x8x1xf32>
    %174 = arith.divf %172, %173 : vector<2x8x1xf32>
    %175 = vector.broadcast %174 : vector<2x8x1xf32> to vector<2x8x32xf32>
    %176 = arith.subf %168, %175 : vector<2x8x32xf32>
    %177 = arith.mulf %176, %176 : vector<2x8x32xf32>
    %cst_114 = arith.constant dense<0.000000e+00> : vector<2x8xf32>
    %178 = vector.multi_reduction <add>, %177, %cst_114 [2] : vector<2x8x32xf32> to vector<2x8xf32>
    %179 = vector.shape_cast %178 : vector<2x8xf32> to vector<2x8x1xf32>
    %cst_115 = arith.constant 3.200000e+01 : f32
    %180 = vector.broadcast %cst_115 : f32 to vector<2x8x1xf32>
    %181 = arith.divf %179, %180 : vector<2x8x1xf32>
    %cst_116 = arith.constant 9.99999974E-6 : f32
    %182 = vector.broadcast %cst_116 : f32 to vector<2x8x1xf32>
    %183 = arith.addf %181, %182 : vector<2x8x1xf32>
    %184 = math.rsqrt %183 : vector<2x8x1xf32>
    %185 = vector.broadcast %184 : vector<2x8x1xf32> to vector<2x8x32xf32>
    %186 = arith.mulf %176, %185 : vector<2x8x32xf32>
    %187 = vector.shape_cast %169 : vector<1x32xf32> to vector<1x1x32xf32>
    %188 = vector.broadcast %187 : vector<1x1x32xf32> to vector<2x8x32xf32>
    %189 = arith.mulf %186, %188 : vector<2x8x32xf32>
    %190 = vector.shape_cast %170 : vector<1x32xf32> to vector<1x1x32xf32>
    %191 = vector.broadcast %190 : vector<1x1x32xf32> to vector<2x8x32xf32>
    %192 = arith.addf %189, %191 : vector<2x8x32xf32>
    %c0_117 = arith.constant 0 : index
    %c0_118 = arith.constant 0 : index
    %c0_119 = arith.constant 0 : index
    %193 = vector.load %arg16[%c0_117, %c0_118, %c0_119] : memref<2x8x32xf32, #tpu.memory_space<vmem>>, vector<2x8x32xf32>
    tpu.vector_store %arg16[%c0_117, %c0_118, %c0_119], %192 {strides = array<i32>} : memref<2x8x32xf32, #tpu.memory_space<vmem>>, vector<2x8x32xf32>,
    return
  }
  func.func @transform_0(%arg0: i32) -> (i32, i32, i32) {
    %c0_i32 = arith.constant 0 : i32
    %c0_i32_0 = arith.constant 0 : i32
    %c0_i32_1 = arith.constant 0 : i32
    %c0_i32_2 = arith.constant 0 : i32
    return %c0_i32, %c0_i32_0, %c0_i32_1 : i32, i32, i32
  }
  func.func @transform_1(%arg0: i32) -> (i32, i32, i32) {
    %c0_i32 = arith.constant 0 : i32
    %c0_i32_0 = arith.constant 0 : i32
    %c0_i32_1 = arith.constant 0 : i32
    %c0_i32_2 = arith.constant 0 : i32
    return %c0_i32, %c0_i32_0, %c0_i32_1 : i32, i32, i32
  }
  func.func @transform_2(%arg0: i32) -> (i32, i32, i32, i32) {
    %c0_i32 = arith.constant 0 : i32
    %c0_i32_0 = arith.constant 0 : i32
    %c0_i32_1 = arith.constant 0 : i32
    %c0_i32_2 = arith.constant 0 : i32
    %c0_i32_3 = arith.constant 0 : i32
    return %c0_i32, %c0_i32_0, %c0_i32_1, %c0_i32_2 : i32, i32, i32, i32
  }
  func.func @transform_3(%arg0: i32) -> (i32, i32, i32, i32) {
    %c0_i32 = arith.constant 0 : i32
    %c0_i32_0 = arith.constant 0 : i32
    %c0_i32_1 = arith.constant 0 : i32
    %c0_i32_2 = arith.constant 0 : i32
    %c0_i32_3 = arith.constant 0 : i32
    return %c0_i32, %c0_i32_0, %c0_i32_1, %c0_i32_2 : i32, i32, i32, i32
  }
  func.func @transform_4(%arg0: i32) -> (i32, i32, i32) {
    %c0_i32 = arith.constant 0 : i32
    %c0_i32_0 = arith.constant 0 : i32
    %c0_i32_1 = arith.constant 0 : i32
    %c0_i32_2 = arith.constant 0 : i32
    return %c0_i32, %c0_i32_0, %c0_i32_1 : i32, i32, i32
  }
  func.func @transform_5(%arg0: i32) -> (i32, i32) {
    %c0_i32 = arith.constant 0 : i32
    %c0_i32_0 = arith.constant 0 : i32
    %c0_i32_1 = arith.constant 0 : i32
    return %c0_i32, %c0_i32_0 : i32, i32
  }
  func.func @transform_6(%arg0: i32) -> (i32, i32, i32, i32) {
    %c0_i32 = arith.constant 0 : i32
    %c0_i32_0 = arith.constant 0 : i32
    %c0_i32_1 = arith.constant 0 : i32
    %c0_i32_2 = arith.constant 0 : i32
    %c0_i32_3 = arith.constant 0 : i32
    return %c0_i32, %c0_i32_0, %c0_i32_1, %c0_i32_2 : i32, i32, i32, i32
  }
  func.func @transform_7(%arg0: i32) -> (i32, i32, i32, i32) {
    %c0_i32 = arith.constant 0 : i32
    %c0_i32_0 = arith.constant 0 : i32
    %c0_i32_1 = arith.constant 0 : i32
    %c0_i32_2 = arith.constant 0 : i32
    %c0_i32_3 = arith.constant 0 : i32
    return %c0_i32, %c0_i32_0, %c0_i32_1, %c0_i32_2 : i32, i32, i32, i32
  }
  func.func @transform_8(%arg0: i32) -> (i32, i32, i32) {
    %c0_i32 = arith.constant 0 : i32
    %c0_i32_0 = arith.constant 0 : i32
    %c0_i32_1 = arith.constant 0 : i32
    %c0_i32_2 = arith.constant 0 : i32
    return %c0_i32, %c0_i32_0, %c0_i32_1 : i32, i32, i32
  }
  func.func @transform_9(%arg0: i32) -> (i32, i32) {
    %c0_i32 = arith.constant 0 : i32
    %c0_i32_0 = arith.constant 0 : i32
    %c0_i32_1 = arith.constant 0 : i32
    return %c0_i32, %c0_i32_0 : i32, i32
  }
  func.func @transform_10(%arg0: i32) -> (i32, i32, i32) {
    %c0_i32 = arith.constant 0 : i32
    %c0_i32_0 = arith.constant 0 : i32
    %c0_i32_1 = arith.constant 0 : i32
    %c0_i32_2 = arith.constant 0 : i32
    return %c0_i32, %c0_i32_0, %c0_i32_1 : i32, i32, i32
  }
  func.func @transform_11(%arg0: i32) -> (i32, i32) {
    %c0_i32 = arith.constant 0 : i32
    %c0_i32_0 = arith.constant 0 : i32
    %c0_i32_1 = arith.constant 0 : i32
    return %c0_i32, %c0_i32_0 : i32, i32
  }
  func.func @transform_12(%arg0: i32) -> (i32, i32, i32) {
    %c0_i32 = arith.constant 0 : i32
    %c0_i32_0 = arith.constant 0 : i32
    %c0_i32_1 = arith.constant 0 : i32
    %c0_i32_2 = arith.constant 0 : i32
    return %c0_i32, %c0_i32_0, %c0_i32_1 : i32, i32, i32
  }
  func.func @transform_13(%arg0: i32) -> (i32, i32) {
    %c0_i32 = arith.constant 0 : i32
    %c0_i32_0 = arith.constant 0 : i32
    %c0_i32_1 = arith.constant 0 : i32
    return %c0_i32, %c0_i32_0 : i32, i32
  }
  func.func @transform_14(%arg0: i32) -> (i32, i32) {
    %c0_i32 = arith.constant 0 : i32
    %c0_i32_0 = arith.constant 0 : i32
    %c0_i32_1 = arith.constant 0 : i32
    return %c0_i32, %c0_i32_0 : i32, i32
  }
  func.func @transform_15(%arg0: i32) -> (i32, i32, i32) {
    %c0_i32 = arith.constant 0 : i32
    %c0_i32_0 = arith.constant 0 : i32
    %c0_i32_1 = arith.constant 0 : i32
    %c0_i32_2 = arith.constant 0 : i32
    return %c0_i32, %c0_i32_0, %c0_i32_1 : i32, i32, i32
  }
}

</mosaic_0001>

<bundles_post_ra>
// kernel: transformer_decoder_layer.1
= control target key start
LH: loop header
LB: loop body
LE: loop exit
PB: predicated region body
PF: predicated region fallthrough
CT: control target
= control target key end

     0   :  { %vm136_vm0 = vcmask 261120   ;;  %s5547_s0 = inlined_call_operand.vmem [shape: f32[2,8,32], index: 0, kind: input, shape index: {}]   ;;  %s5548_s1 = inlined_call_operand.vmem [shape: f32[2,8,32], index: 1, kind: input, shape index: {}]   ;;  %s5549_s2 = inlined_call_operand.vmem [shape: bf16[3,8,32,8], index: 2, kind: input, shape index: {}]   ;;  %s5550_s3 = inlined_call_operand.vmem [shape: f32[3,8,1,8], index: 3, kind: input, shape index: {}]   ;;  %s5551_s4 = inlined_call_operand.vmem [shape: bf16[8,8,32], index: 4, kind: input, shape index: {}]   ;;  %s5552_s5 = inlined_call_operand.vmem [shape: f32[1,32], index: 5, kind: input, shape index: {}]   ;;  %s5553_s6 = inlined_call_operand.vmem [shape: bf16[3,8,32,8], index: 6, kind: input, shape index: {}]   ;;  %s5554_s7 = inlined_call_operand.vmem [shape: f32[3,8,1,8], index: 7, kind: input, shape index: {}]   ;;  %s5555_s8 = inlined_call_operand.vmem [shape: bf16[8,8,32], index: 8, kind: input, shape index: {}]   ;;  %s5556_s9 = inlined_call_operand.vmem [shape: f32[1,32], index: 9, kind: input, shape index: {}]   ;;  %s5557_s10 = inlined_call_operand.vmem [shape: bf16[2,32,64], index: 10, kind: input, shape index: {}]   ;;  %s5558_s11 = inlined_call_operand.vmem [shape: f32[1,64], index: 11, kind: input, shape index: {}]   ;;  %s5559_s12 = inlined_call_operand.vmem [shape: bf16[2,64,32], index: 12, kind: input, shape index: {}]   ;;  %s5560_s13 = inlined_call_operand.vmem [shape: f32[1,32], index: 13, kind: input, shape index: {}]   ;;  %s5561_s14 = inlined_call_operand.vmem [shape: f32[6,32], index: 14, kind: input, shape index: {}]   ;;  %s5562_s15 = inlined_call_operand.hbm [shape: f32[2,8,32], index: 15, kind: output, shape index: {}]  }
   0x1   :  { %v4180_v0 = vld [vmem:[%s5549_s2 + $0x8] sm:$0xff]  ;;  %v4182_v1 = vld [vmem:[%s5549_s2 + $0x18] sm:$0xff]  ;;  %v4179_v4 = vld [vmem:[%s5549_s2] sm:$0xff] }
   0x2   :  { %v4184_v2 = vld [vmem:[%s5549_s2 + $0x28] sm:$0xff]  ;;  %v4186_v3 = vld [vmem:[%s5549_s2 + $0x38] sm:$0xff]  ;;  %146 = vmatpush.bf16.msra.mxu0 %v4180_v0  ;;  %174 = vmatpush.bf16.msra.mxu1 %v4182_v1  ;;  %v4181_v5 = vld [vmem:[%s5549_s2 + $0x10] sm:$0xff] }
   0x3   :  { %v52_v6 = vld [vmem:[%s5547_s0] sm:$0xff]  ;;  %199 = vmatpush.bf16.msra.mxu2 %v4184_v2  ;;  %224 = vmatpush.bf16.msra.mxu3 %v4186_v3  ;;  %v4185_v8 = vld [vmem:[%s5549_s2 + $0x30] sm:$0xff]  ;;  %v53_v9 = vld [vmem:[%s5547_s0 + $0x8] sm:$0xff] }
   0x4   :  { %v4183_v7 = vld [vmem:[%s5549_s2 + $0x20] sm:$0xff]  ;;  %v4188_v10 = vld [vmem:[%s5549_s2 + $0x48] sm:$0xff]  ;;  %v4190_v11 = vld [vmem:[%s5549_s2 + $0x58] sm:$0xff]  ;;  %v4575_v12 = vpack.c.bf16 %v52_v6, %v52_v6  ;;  %v4577_v13 = vpack.c.bf16 %v53_v9, %v53_v9 }
   0x5   :  { %v4192_v14 = vld [vmem:[%s5549_s2 + $0x68] sm:$0xff]  ;;  %v4194_v15 = vld [vmem:[%s5549_s2 + $0x78] sm:$0xff]  ;;  %v4187_v16 = vld [vmem:[%s5549_s2 + $0x40] sm:$0xff] }
   0x6   :  { %147 = vmatpush.bf16.msra.mxu0 %v4179_v4  ;;  %175 = vmatpush.bf16.msra.mxu1 %v4181_v5  ;;  %v4189_v17 = vld [vmem:[%s5549_s2 + $0x50] sm:$0xff]  ;;  %v4196_v18 = vld [vmem:[%s5549_s2 + $0x88] sm:$0xff]  ;;  %v4198_v19 = vld [vmem:[%s5549_s2 + $0x98] sm:$0xff] }
   0x7   :  { %200 = vmatpush.bf16.msra.mxu2 %v4183_v7  ;;  %225 = vmatpush.bf16.msra.mxu3 %v4185_v8  ;;  %v4191_v20 = vld [vmem:[%s5549_s2 + $0x60] sm:$0xff]  ;;  %v4193_v21 = vld [vmem:[%s5549_s2 + $0x70] sm:$0xff]  ;;  %v4200_v22 = vld [vmem:[%s5549_s2 + $0xa8] sm:$0xff] }
   0x8   :  { %v4202_v23 = vld [vmem:[%s5549_s2 + $0xb8] sm:$0xff]  ;;  %v4195_v24 = vld [vmem:[%s5549_s2 + $0x80] sm:$0xff]  ;;  %v4197_v25 = vld [vmem:[%s5549_s2 + $0x90] sm:$0xff] }
   0x9   :  { %3495 = vmatmul.msk.bf16.vlgmr.msra.gmra.mxu0 %vm136_vm0, %v4575_v12  ;;  %3504 = vmatmul.msk.bf16.vlgmr.msra.gmra.mxu1 %vm136_vm0, %v4577_v13  ;;  %v4199_v26 = vld [vmem:[%s5549_s2 + $0xa0] sm:$0xff]  ;;  %v4201_v27 = vld [vmem:[%s5549_s2 + $0xb0] sm:$0xff]  ;;  %v4204_v28 = vld [vmem:[%s5549_s2 + $0xc8] sm:$0xff] }
   0xa   :  { %249 = vmatpush.bf16.msrb.mxu0 %v4188_v10  ;;  %274 = vmatpush.bf16.msrb.mxu1 %v4190_v11  ;;  %v4206_v29 = vld [vmem:[%s5549_s2 + $0xd8] sm:$0xff]  ;;  %v4208_v30 = vld [vmem:[%s5549_s2 + $0xe8] sm:$0xff]  ;;  %v4203_v32 = vld [vmem:[%s5549_s2 + $0xc0] sm:$0xff] }
   0xb   :  { %3513 = vmatmul.msk.bf16.vlgmr.msra.gmra.mxu2 %vm136_vm0, %v4575_v12  ;;  %3522 = vmatmul.msk.bf16.vlgmr.msra.gmra.mxu3 %vm136_vm0, %v4577_v13  ;;  %v4210_v31 = vld [vmem:[%s5549_s2 + $0xf8] sm:$0xff]  ;;  %v4205_v33 = vld [vmem:[%s5549_s2 + $0xd0] sm:$0xff]  ;;  %v4207_v34 = vld [vmem:[%s5549_s2 + $0xe0] sm:$0xff] }
   0xc   :  { %299 = vmatpush.bf16.msrb.mxu2 %v4192_v14  ;;  %324 = vmatpush.bf16.msrb.mxu3 %v4194_v15  ;;  %v4209_v35 = vld [vmem:[%s5549_s2 + $0xf0] sm:$0xff] }
   0xe   :  { %250 = vmatpush.bf16.msrb.mxu0 %v4187_v16  ;;  %275 = vmatpush.bf16.msrb.mxu1 %v4189_v17 }
  0x10   :  { %300 = vmatpush.bf16.msrb.mxu2 %v4191_v20  ;;  %325 = vmatpush.bf16.msrb.mxu3 %v4193_v21 }
  0x12   :  { %415 = vmatpush.bf16.msra.mxu0 %v4196_v18  ;;  %440 = vmatpush.bf16.msra.mxu1 %v4198_v19 }
  0x14   :  { %465 = vmatpush.bf16.msra.mxu2 %v4200_v22  ;;  %490 = vmatpush.bf16.msra.mxu3 %v4202_v23 }
  0x16   :  { %416 = vmatpush.bf16.msra.mxu0 %v4195_v24  ;;  %441 = vmatpush.bf16.msra.mxu1 %v4197_v25 }
  0x18   :  { %466 = vmatpush.bf16.msra.mxu2 %v4199_v26  ;;  %491 = vmatpush.bf16.msra.mxu3 %v4201_v27 }
  0x19   :  { %3531 = vmatmul.msk.bf16.vlgmr.msrb.gmra.mxu0 %vm136_vm0, %v4575_v12  ;;  %3540 = vmatmul.msk.bf16.vlgmr.msrb.gmra.mxu1 %vm136_vm0, %v4577_v13 }
  0x1a   :  { %515 = vmatpush.bf16.msrb.mxu0 %v4204_v28  ;;  %540 = vmatpush.bf16.msrb.mxu1 %v4206_v29 }
  0x1b   :  { %3549 = vmatmul.msk.bf16.vlgmr.msrb.gmra.mxu2 %vm136_vm0, %v4575_v12  ;;  %3558 = vmatmul.msk.bf16.vlgmr.msrb.gmra.mxu3 %vm136_vm0, %v4577_v13 }
  0x1c   :  { %565 = vmatpush.bf16.msrb.mxu2 %v4208_v30  ;;  %590 = vmatpush.bf16.msrb.mxu3 %v4210_v31 }
  0x1d   :  { %20 = vsyncpa [#allocation3], 0  ;;  %v4216_v36 = vld [vmem:[%s5549_s2 + $0x128] sm:$0xff]  ;;  %v4214_v38 = vld [vmem:[%s5549_s2 + $0x118] sm:$0xff]  ;;  %vm879_vm1 = vcmask 64512   ;;  %vm1251_vm2 = vcmask 1043456  }
  0x1e   :  { %516 = vmatpush.bf16.msrb.mxu0 %v4203_v32  ;;  %541 = vmatpush.bf16.msrb.mxu1 %v4205_v33  ;;  %v4212_v37 = vld [vmem:[%s5549_s2 + $0x108] sm:$0xff]  ;;  %v4215_v39 = vld [vmem:[%s5549_s2 + $0x120] sm:$0xff]  ;;  %v4213_v41 = vld [vmem:[%s5549_s2 + $0x110] sm:$0xff]  ;;  %s3475_s18 = sshll.u32 %s5562_s15, 4  ;;  %s3476_s18 = int_to_ptr.hbm [resolvable:$true] %s3475_s18 }
  0x1f   :  { %v4211_v40 = vld [vmem:[%s5549_s2 + $0x100] sm:$0xff]  ;;  %v4218_v42 = vld [vmem:[%s5549_s2 + $0x138] sm:$0xff]  ;;  %v4217_v43 = vld [vmem:[%s5549_s2 + $0x130] sm:$0xff] }
  0x20   :  { %566 = vmatpush.bf16.msrb.mxu2 %v4207_v34  ;;  %591 = vmatpush.bf16.msrb.mxu3 %v4209_v35  ;;  %v4224_v44 = vld [vmem:[%s5549_s2 + $0x168] sm:$0xff]  ;;  %v4222_v46 = vld [vmem:[%s5549_s2 + $0x158] sm:$0xff]  ;;  %v4223_v47 = vld [vmem:[%s5549_s2 + $0x160] sm:$0xff] }
  0x21   :  { %v4220_v45 = vld [vmem:[%s5549_s2 + $0x148] sm:$0xff]  ;;  %v4219_v48 = vld [vmem:[%s5549_s2 + $0x140] sm:$0xff]  ;;  %v4221_v49 = vld [vmem:[%s5549_s2 + $0x150] sm:$0xff] }
  0x22   :  { %v4226_v50 = vld [vmem:[%s5549_s2 + $0x178] sm:$0xff]  ;;  %v4225_v51 = vld [vmem:[%s5549_s2 + $0x170] sm:$0xff]  ;;  %v4299_v2 = vld [vmem:[%s5550_s3 + $0x8] ss:$0 sm:$0xff] }
  0x23   :  { %v4300_v3 = vld [vmem:[%s5550_s3 + $0x9] ss:$0 sm:$0xff]  ;;  %v4291_v10 = vld [vmem:[%s5550_s3] ss:$0 sm:$0xff]  ;;  %v4301_v14 = vld [vmem:[%s5550_s3 + $0xa] ss:$0 sm:$0xff] }
  0x24   :  { %v4302_v15 = vld [vmem:[%s5550_s3 + $0xb] ss:$0 sm:$0xff]  ;;  %v4293_v26 = vld [vmem:[%s5550_s3 + $0x2] ss:$0 sm:$0xff]  ;;  %v4294_v27 = vld [vmem:[%s5550_s3 + $0x3] ss:$0 sm:$0xff] }
  0x25   :  { %v4303_v34 = vld [vmem:[%s5550_s3 + $0xc] ss:$0 sm:$0xff]  ;;  %v4304_v35 = vld [vmem:[%s5550_s3 + $0xd] ss:$0 sm:$0xff] }
  0x29   :  { %3607 = vmatmul.msk.bf16.vlgmr.msra.gmra.mxu0 %vm136_vm0, %v4575_v12  ;;  %3616 = vmatmul.msk.bf16.vlgmr.msra.gmra.mxu1 %vm136_vm0, %v4577_v13 }
  0x2a   :  { %681 = vmatpush.bf16.msra.mxu0 %v4212_v37  ;;  %706 = vmatpush.bf16.msra.mxu1 %v4214_v38 }
  0x2b   :  { %3625 = vmatmul.msk.bf16.vlgmr.msra.gmra.mxu2 %vm136_vm0, %v4575_v12  ;;  %3634 = vmatmul.msk.bf16.vlgmr.msra.gmra.mxu3 %vm136_vm0, %v4577_v13 }
  0x2c   :  { %731 = vmatpush.bf16.msra.mxu2 %v4216_v36  ;;  %756 = vmatpush.bf16.msra.mxu3 %v4218_v42 }
  0x2e   :  { %682 = vmatpush.bf16.msra.mxu0 %v4211_v40  ;;  %707 = vmatpush.bf16.msra.mxu1 %v4213_v41 }
  0x30   :  { %732 = vmatpush.bf16.msra.mxu2 %v4215_v39  ;;  %757 = vmatpush.bf16.msra.mxu3 %v4217_v43 }
  0x39   :  { %3643 = vmatmul.msk.bf16.vlgmr.msrb.gmra.mxu0 %vm136_vm0, %v4575_v12  ;;  %3652 = vmatmul.msk.bf16.vlgmr.msrb.gmra.mxu1 %vm136_vm0, %v4577_v13 }
  0x3a   :  { %781 = vmatpush.bf16.msrb.mxu0 %v4220_v45  ;;  %806 = vmatpush.bf16.msrb.mxu1 %v4222_v46  ;;  %v4295_v46 = vld [vmem:[%s5550_s3 + $0x4] ss:$0 sm:$0xff] }
  0x3b   :  { %3661 = vmatmul.msk.bf16.vlgmr.msrb.gmra.mxu2 %vm136_vm0, %v4575_v12  ;;  %3670 = vmatmul.msk.bf16.vlgmr.msrb.gmra.mxu3 %vm136_vm0, %v4577_v13 }
  0x3c   :  { %831 = vmatpush.bf16.msrb.mxu2 %v4224_v44  ;;  %856 = vmatpush.bf16.msrb.mxu3 %v4226_v50  ;;  %v4305_v50 = vld [vmem:[%s5550_s3 + $0xe] ss:$0 sm:$0xff] }
  0x3e   :  { %782 = vmatpush.bf16.msrb.mxu0 %v4219_v48  ;;  %807 = vmatpush.bf16.msrb.mxu1 %v4221_v49  ;;  %v4296_v49 = vld [vmem:[%s5550_s3 + $0x5] ss:$0 sm:$0xff] }
  0x40   :  { %832 = vmatpush.bf16.msrb.mxu2 %v4223_v47  ;;  %857 = vmatpush.bf16.msrb.mxu3 %v4225_v51  ;;  %v4306_v51 = vld [vmem:[%s5550_s3 + $0xf] ss:$0 sm:$0xff] }
  0x49   :  { %3719 = vmatmul.msk.bf16.vlgmr.msra.gmra.mxu0 %vm136_vm0, %v4575_v12  ;;  %3728 = vmatmul.msk.bf16.vlgmr.msra.gmra.mxu1 %vm136_vm0, %v4577_v13 }
  0x4b   :  { %3737 = vmatmul.msk.bf16.vlgmr.msra.gmra.mxu2 %vm136_vm0, %v4575_v12  ;;  %3746 = vmatmul.msk.bf16.vlgmr.msra.gmra.mxu3 %vm136_vm0, %v4577_v13 }
  0x59   :  { %3755 = vmatmul.msk.bf16.vlgmr.msrb.gmra.mxu0 %vm136_vm0, %v4575_v12  ;;  %3764 = vmatmul.msk.bf16.vlgmr.msrb.gmra.mxu1 %vm136_vm0, %v4577_v13 }
  0x5b   :  { %3773 = vmatmul.msk.bf16.vlgmr.msrb.gmra.mxu2 %vm136_vm0, %v4575_v12  ;;  %3782 = vmatmul.msk.bf16.vlgmr.msrb.gmra.mxu3 %vm136_vm0, %v4577_v13  ;;  %v4292_v13 = vld [vmem:[%s5550_s3 + $0x1] ss:$0 sm:$0xff] }
  0x86   :  { %v149_v52 = vpop.f32.mrf.mxu0  ;;  %v177_v53 = vpop.f32.mrf.mxu1 }
  0x87   :  { %v150_v20 = vadd.f32 %v4291_v10, %v149_v52  ;;  %v178_v21 = vadd.f32 %v4292_v13, %v177_v53 }
  0x89   :  { %v863_v30 = vpack.c.bf16 %v150_v20, %v150_v20  ;;  %v864_v31 = vpack.c.bf16 %v178_v21, %v178_v21 }
  0x8e   :  { %v202_v54 = vpop.f32.mrf.mxu2  ;;  %v227_v55 = vpop.f32.mrf.mxu3 }
  0x8f   :  { %v151_v56 = vpop.f32.mrf.mxu0  ;;  %v179_v57 = vpop.f32.mrf.mxu1  ;;  %v203_v36 = vadd.f32 %v4293_v26, %v202_v54  ;;  %v228_v37 = vadd.f32 %v4294_v27, %v227_v55 }
  0x91   :  { %v865_v44 = vpack.c.bf16 %v203_v36, %v203_v36  ;;  %v866_v45 = vpack.c.bf16 %v228_v37, %v228_v37 }
  0x96   :  { %v204_v58 = vpop.f32.mrf.mxu2  ;;  %v229_v59 = vpop.f32.mrf.mxu3 }
  0x97   :  { %v4741_v60 = vpop.f32.mrf.mxu0  ;;  %v4743_v61 = vpop.f32.mrf.mxu1 }
  0x98   :  { %v253_v56 = vadd.f32 %v4295_v46, %v4741_v60  ;;  %v278_v57 = vadd.f32 %v4296_v49, %v4743_v61 }
  0x9e   :  { %v4745_v62 = vpop.f32.mrf.mxu2  ;;  %v4747_v63 = vpop.f32.mrf.mxu3 }
  0x9f   :  { %v254_v0 = vpop.f32.mrf.mxu0  ;;  %v279_v1 = vpop.f32.mrf.mxu1 }
  0xa6   :  { %v304_v4 = vpop.f32.mrf.mxu2  ;;  %v329_v5 = vpop.f32.mrf.mxu3 }
  0xa7   :  { %v418_v6 = vpop.f32.mrf.mxu0  ;;  %v443_v7 = vpop.f32.mrf.mxu1 }
  0xa8   :  { %v419_v8 = vadd.f32 %v4299_v2, %v418_v6  ;;  %v444_v9 = vadd.f32 %v4300_v3, %v443_v7  ;;  %v4297_v2 = vld [vmem:[%s5550_s3 + $0x6] ss:$0 sm:$0xff]  ;;  %v4298_v3 = vld [vmem:[%s5550_s3 + $0x7] ss:$0 sm:$0xff]  ;;  %v867_v6 = vpack.c.bf16 %v253_v56, %v253_v56  ;;  %v868_v7 = vpack.c.bf16 %v278_v57, %v278_v57 }
  0xaa   :  { %v871_v11 = vpack.c.bf16 %v419_v8, %v419_v8  ;;  %v872_v12 = vpack.c.bf16 %v444_v9, %v444_v9  ;;  %v303_v8 = vadd.f32 %v4297_v2, %v4745_v62  ;;  %v328_v9 = vadd.f32 %v4298_v3, %v4747_v63  ;;  %v4308_v62 = vld [vmem:[%s5550_s3 + $0x11] ss:$0 sm:$0xff] }
  0xac   :  { %v884_v16 = vsel %vm879_vm1, %v871_v11, 0  ;;  %v903_v17 = vsel %vm879_vm1, %v872_v12, 0  ;;  %v869_v12 = vpack.c.bf16 %v303_v8, %v303_v8  ;;  %v870_v13 = vpack.c.bf16 %v328_v9, %v328_v9 }
  0xad   :  { %893 = vmatpush.bf16.xpose.msra.mxu0 %v884_v16  ;;  %912 = vmatpush.bf16.xpose.msra.mxu1 %v903_v17 }
  0xae   :  { %v468_v18 = vpop.f32.mrf.mxu2  ;;  %v493_v19 = vpop.f32.mrf.mxu3 }
  0xaf   :  { %v469_v22 = vadd.f32 %v4301_v14, %v468_v18  ;;  %v494_v23 = vadd.f32 %v4302_v15, %v493_v19  ;;  %v420_v24 = vpop.f32.mrf.mxu0  ;;  %v445_v25 = vpop.f32.mrf.mxu1  ;;  %v4307_v14 = vld [vmem:[%s5550_s3 + $0x10] ss:$0 sm:$0xff]  ;;  %v4309_v18 = vld [vmem:[%s5550_s3 + $0x12] ss:$0 sm:$0xff] }
  0xb1   :  { %v873_v28 = vpack.c.bf16 %v469_v22, %v469_v22  ;;  %v874_v29 = vpack.c.bf16 %v494_v23, %v494_v23 }
  0xb3   :  { %v922_v32 = vsel %vm879_vm1, %v873_v28, 0  ;;  %v941_v33 = vsel %vm879_vm1, %v874_v29, 0  ;;  %v4310_v29 = vld [vmem:[%s5550_s3 + $0x13] ss:$0 sm:$0xff] }
  0xb4   :  { %931 = vmatpush.bf16.xpose.msra.mxu2 %v922_v32  ;;  %950 = vmatpush.bf16.xpose.msra.mxu3 %v941_v33  ;;  %v4311_v33 = vld [vmem:[%s5550_s3 + $0x14] ss:$0 sm:$0xff] }
  0xb5   :  { %3783 = vmatmul.msk.bf16.vlgmr.msra.gmra.mxu0 %vm879_vm1, %v863_v30  ;;  %3784 = vmatmul.msk.bf16.vlgmr.msra.gmra.mxu1 %vm879_vm1, %v864_v31 }
  0xb6   :  { %v470_v38 = vpop.f32.mrf.mxu2  ;;  %v495_v39 = vpop.f32.mrf.mxu3 }
  0xb7   :  { %v518_v40 = vpop.f32.mrf.mxu0  ;;  %v543_v41 = vpop.f32.mrf.mxu1 }
  0xb8   :  { %v519_v42 = vadd.f32 %v4303_v34, %v518_v40  ;;  %v544_v43 = vadd.f32 %v4304_v35, %v543_v41  ;;  %v4312_v34 = vld [vmem:[%s5550_s3 + $0x15] ss:$0 sm:$0xff]  ;;  %v4313_v41 = vld [vmem:[%s5550_s3 + $0x16] ss:$0 sm:$0xff] }
  0xba   :  { %v875_v47 = vpack.c.bf16 %v519_v42, %v519_v42  ;;  %v876_v48 = vpack.c.bf16 %v544_v43, %v544_v43 }
  0xbb   :  { %3785 = vmatmul.msk.bf16.vlgmr.msra.gmra.mxu2 %vm879_vm1, %v865_v44  ;;  %3786 = vmatmul.msk.bf16.vlgmr.msra.gmra.mxu3 %vm879_vm1, %v866_v45 }
  0xbc   :  { %v960_v52 = vsel %vm879_vm1, %v875_v47, 0  ;;  %v979_v53 = vsel %vm879_vm1, %v876_v48, 0 }
  0xbd   :  { %969 = vmatpush.bf16.xpose.msrb.mxu0 %v960_v52  ;;  %988 = vmatpush.bf16.xpose.msrb.mxu1 %v979_v53  ;;  %v4314_v53 = vld [vmem:[%s5550_s3 + $0x17] ss:$0 sm:$0xff] }
  0xbe   :  { %v568_v54 = vpop.f32.mrf.mxu2  ;;  %v593_v55 = vpop.f32.mrf.mxu3 }
  0xbf   :  { %v569_v58 = vadd.f32 %v4305_v50, %v568_v54  ;;  %v594_v59 = vadd.f32 %v4306_v51, %v593_v55  ;;  %v520_v0 = vpop.f32.mrf.mxu0  ;;  %v545_v1 = vpop.f32.mrf.mxu1 }
  0xc1   :  { %v877_v4 = vpack.c.bf16 %v569_v58, %v569_v58  ;;  %v878_v5 = vpack.c.bf16 %v594_v59, %v594_v59 }
  0xc3   :  { %v998_v60 = vsel %vm879_vm1, %v877_v4, 0  ;;  %v1017_v61 = vsel %vm879_vm1, %v878_v5, 0 }
  0xc4   :  { %1007 = vmatpush.bf16.xpose.msrb.mxu2 %v998_v60  ;;  %1026 = vmatpush.bf16.xpose.msrb.mxu3 %v1017_v61 }
  0xc5   :  { %3787 = vmatmul.msk.bf16.vlgmr.msrb.gmra.mxu0 %vm879_vm1, %v867_v6  ;;  %3788 = vmatmul.msk.bf16.vlgmr.msrb.gmra.mxu1 %vm879_vm1, %v868_v7 }
  0xc6   :  { %v570_v10 = vpop.f32.mrf.mxu2  ;;  %v595_v11 = vpop.f32.mrf.mxu3 }
  0xc7   :  { %v684_v63 = vpop.f32.mrf.mxu0  ;;  %v709_v15 = vpop.f32.mrf.mxu1 }
  0xc8   :  { %v685_v16 = vadd.f32 %v4307_v14, %v684_v63  ;;  %v710_v17 = vadd.f32 %v4308_v62, %v709_v15 }
  0xca   :  { %v1240_v19 = vpack.c.bf16 %v685_v16, %v685_v16  ;;  %v1241_v20 = vpack.c.bf16 %v710_v17, %v710_v17 }
  0xcb   :  { %3789 = vmatmul.msk.bf16.vlgmr.msrb.gmra.mxu2 %vm879_vm1, %v869_v12  ;;  %3790 = vmatmul.msk.bf16.vlgmr.msrb.gmra.mxu3 %vm879_vm1, %v870_v13 }
  0xcc   :  { %v1253_v22 = vsel %vm1251_vm2, %v1240_v19, 0  ;;  %v1272_v23 = vsel %vm1251_vm2, %v1241_v20, 0 }
  0xcd   :  { %1262 = vmatpush.bf16.msra.mxu0 %v1253_v22  ;;  %1281 = vmatpush.bf16.msra.mxu1 %v1272_v23 }
  0xce   :  { %v734_v21 = vpop.f32.mrf.mxu2  ;;  %v759_v30 = vpop.f32.mrf.mxu3 }
  0xcf   :  { %v735_v24 = vadd.f32 %v4309_v18, %v734_v21  ;;  %v686_v26 = vpop.f32.mrf.mxu0  ;;  %v711_v27 = vpop.f32.mrf.mxu1  ;;  %v760_v32 = vadd.f32 %v4310_v29, %v759_v30 }
  0xd1   :  { %v1242_v25 = vpack.c.bf16 %v735_v24, %v735_v24  ;;  %v1243_v35 = vpack.c.bf16 %v760_v32, %v760_v32 }
  0xd3   :  { %v1291_v28 = vsel %vm1251_vm2, %v1242_v25, 0  ;;  %v1310_v38 = vsel %vm1251_vm2, %v1243_v35, 0 }
  0xd4   :  { %1300 = vmatpush.bf16.msra.mxu2 %v1291_v28  ;;  %1319 = vmatpush.bf16.msra.mxu3 %v1310_v38 }
  0xd6   :  { %v736_v31 = vpop.f32.mrf.mxu2  ;;  %v761_v44 = vpop.f32.mrf.mxu3 }
  0xd7   :  { %v784_v36 = vpop.f32.mrf.mxu0  ;;  %v809_v37 = vpop.f32.mrf.mxu1 }
  0xd8   :  { %v785_v39 = vadd.f32 %v4311_v33, %v784_v36  ;;  %v810_v40 = vadd.f32 %v4312_v34, %v809_v37 }
  0xda   :  { %v1244_v42 = vpack.c.bf16 %v785_v39, %v785_v39  ;;  %v1245_v43 = vpack.c.bf16 %v810_v40, %v810_v40 }
  0xdc   :  { %v1329_v46 = vsel %vm1251_vm2, %v1244_v42, 0  ;;  %v1348_v47 = vsel %vm1251_vm2, %v1245_v43, 0 }
  0xdd   :  { %1338 = vmatpush.bf16.msrb.mxu0 %v1329_v46  ;;  %1357 = vmatpush.bf16.msrb.mxu1 %v1348_v47 }
  0xde   :  { %v834_v45 = vpop.f32.mrf.mxu2  ;;  %v859_v54 = vpop.f32.mrf.mxu3 }
  0xdf   :  { %v835_v48 = vadd.f32 %v4313_v41, %v834_v45  ;;  %v786_v50 = vpop.f32.mrf.mxu0  ;;  %v811_v51 = vpop.f32.mrf.mxu1  ;;  %v860_v56 = vadd.f32 %v4314_v53, %v859_v54 }
  0xe1   :  { %v1246_v49 = vpack.c.bf16 %v835_v48, %v835_v48  ;;  %v1247_v57 = vpack.c.bf16 %v860_v56, %v860_v56 }
  0xe3   :  { %v1367_v52 = vsel %vm1251_vm2, %v1246_v49, 0  ;;  %v1386_v58 = vsel %vm1251_vm2, %v1247_v57, 0 }
  0xe4   :  { %1376 = vmatpush.bf16.msrb.mxu2 %v1367_v52  ;;  %1395 = vmatpush.bf16.msrb.mxu3 %v1386_v58 }
  0xe6   :  { %v836_v55 = vpop.f32.mrf.mxu2  ;;  %v861_v59 = vpop.f32.mrf.mxu3 }
 0x132   :  { %v895_v0 = vpop.f32.mrf.mxu0  ;;  %v914_v1 = vpop.f32.mrf.mxu1 }
 0x133   :  { %v1032_v2 = vmul.f32 0.35355338, %v895_v0  ;;  %v1033_v4 = vmul.f32 0.35355338, %v914_v1 }
 0x135   :  { %v1040_v3 = vsel %vm879_vm1, %v1032_v2, -inf  ;;  %v1043_v7 = vsel %vm879_vm1, %v1033_v4, -inf }
 0x136   :  { %1041 = vmax.xlane.f32.xlu1 %v1040_v3 }
 0x13a   :  { %v897_v5 = vpop.f32.mrf.mxu0  ;;  %v916_v6 = vpop.f32.mrf.mxu1 }
 0x13e   :  { %v933_v60 = vpop.f32.mrf.mxu2  ;;  %v952_v61 = vpop.f32.mrf.mxu3  ;;  %1044 = vmax.xlane.f32.xlu1 %v1043_v7 }
 0x13f   :  { %v1034_v8 = vmul.f32 0.35355338, %v933_v60  ;;  %v1035_v13 = vmul.f32 0.35355338, %v952_v61 }
 0x141   :  { %v1046_v9 = vsel %vm879_vm1, %v1034_v8, -inf  ;;  %v1049_v15 = vsel %vm879_vm1, %v1035_v13, -inf }
 0x142   :  { %v990_v10 = vpop.f32.mrf.mxu1  ;;  %1047 = vmax.xlane.f32.xlu0 %v1046_v9  ;;  %v971_v11 = vpop.f32.mrf.mxu0 }
 0x143   :  { %v1037_v12 = vmul.f32 0.35355338, %v990_v10  ;;  %v1036_v18 = vmul.f32 0.35355338, %v971_v11 }
 0x145   :  { %v1055_v14 = vsel %vm879_vm1, %v1037_v12, -inf  ;;  %v1052_v23 = vsel %vm879_vm1, %v1036_v18, -inf }
 0x146   :  { %v935_v62 = vpop.f32.mrf.mxu2  ;;  %v954_v63 = vpop.f32.mrf.mxu3  ;;  %1056 = vmax.xlane.f32.xlu1 %v1055_v14 }
 0x14a   :  { %v992_v16 = vpop.f32.mrf.mxu1  ;;  %1050 = vmax.xlane.f32.xlu0 %v1049_v15  ;;  %v973_v17 = vpop.f32.mrf.mxu0 }
 0x14e   :  { %v1009_v19 = vpop.f32.mrf.mxu2  ;;  %v1028_v20 = vpop.f32.mrf.mxu3 }
 0x14f   :  { %v1038_v21 = vmul.f32 0.35355338, %v1009_v19  ;;  %v1039_v24 = vmul.f32 0.35355338, %v1028_v20 }
 0x151   :  { %v1058_v22 = vsel %vm879_vm1, %v1038_v21, -inf  ;;  %v1061_v27 = vsel %vm879_vm1, %v1039_v24, -inf }
 0x152   :  { %1059 = vmax.xlane.f32.xlu2 %v1058_v22  ;;  %1053 = vmax.xlane.f32.xlu0 %v1052_v23 }
 0x156   :  { %v1011_v25 = vpop.f32.mrf.mxu2  ;;  %v1030_v26 = vpop.f32.mrf.mxu3 }
 0x15a   :  { %1062 = vmax.xlane.f32.xlu2 %v1061_v27 }
 0x1a9   :  { %v1042_v28 = vpop.xlane.xlu1 %1041 }
 0x1aa   :  { %v1064_v29 = vsub.f32 %v1032_v2, %v1042_v28 }
 0x1ac   :  { %v1072_v30 = vmul.f32 1.442695, %v1064_v29 }
 0x1ae   :  { %4349 = vpow2.f32 %v1072_v30 }
 0x1b1   :  { %v1045_v32 = vpop.xlane.xlu1 %1044 }
 0x1b2   :  { %v1065_v36 = vsub.f32 %v1033_v4, %v1045_v32 }
 0x1b4   :  { %v4857_v31 = vpop.eup %4349  ;;  %v1074_v38 = vmul.f32 1.442695, %v1065_v36 }
 0x1b5   :  { %v1048_v33 = vpop.xlane.xlu0 %1047  ;;  %v1088_v34 = vsel %vm879_vm1, %v4857_v31, 0.0 }
 0x1b6   :  { %v1066_v35 = vsub.f32 %v1034_v8, %v1048_v33  ;;  %1089 = vadd.xlane.f32.xlu1 %v1088_v34 }
 0x1b8   :  { %v1076_v37 = vmul.f32 1.442695, %v1066_v35 }
 0x1b9   :  { %v1057_v44 = vpop.xlane.xlu1 %1056 }
 0x1ba   :  { %4351 = vpow2.f32 %v1076_v37  ;;  %v1069_v51 = vsub.f32 %v1037_v12, %v1057_v44 }
 0x1bb   :  { %4353 = vpow2.f32 %v1074_v38 }
 0x1bc   :  { %v1082_v56 = vmul.f32 1.442695, %v1069_v51 }
 0x1bd   :  { %v1051_v39 = vpop.xlane.xlu0 %1050 }
 0x1be   :  { %v1067_v40 = vsub.f32 %v1035_v13, %v1051_v39 }
 0x1c0   :  { %v4861_v41 = vpop.eup %4351  ;;  %v1078_v42 = vmul.f32 1.442695, %v1067_v40 }
 0x1c1   :  { %v1094_v43 = vsel %vm879_vm1, %v4861_v41, 0.0  ;;  %v4865_v47 = vpop.eup %4353 }
 0x1c2   :  { %4355 = vpow2.f32 %v1078_v42  ;;  %1095 = vadd.xlane.f32.xlu2 %v1094_v43  ;;  %v1091_v54 = vsel %vm879_vm1, %v4865_v47, 0.0 }
 0x1c5   :  { %v1060_v45 = vpop.xlane.xlu2 %1059  ;;  %v1054_v46 = vpop.xlane.xlu0 %1053 }
 0x1c6   :  { %v1070_v48 = vsub.f32 %v1038_v21, %v1060_v45  ;;  %v1068_v49 = vsub.f32 %v1036_v18, %v1054_v46 }
 0x1c8   :  { %v4867_v50 = vpop.eup %4355  ;;  %v1084_v52 = vmul.f32 1.442695, %v1070_v48  ;;  %v1080_v53 = vmul.f32 1.442695, %v1068_v49 }
 0x1c9   :  { %v1097_v55 = vsel %vm879_vm1, %v4867_v50, 0.0 }
 0x1ca   :  { %4357 = vpow2.f32 %v1084_v52  ;;  %1092 = vadd.xlane.f32.xlu2 %v1091_v54  ;;  %1098 = vadd.xlane.f32.xlu0 %v1097_v55 }
 0x1cb   :  { %4359 = vpow2.f32 %v1080_v53 }
 0x1cc   :  { %4361 = vpow2.f32 %v1082_v56 }
 0x1cd   :  { %v1063_v57 = vpop.xlane.xlu2 %1062 }
 0x1ce   :  { %v1071_v58 = vsub.f32 %v1039_v24, %v1063_v57 }
 0x1d0   :  { %v4873_v59 = vpop.eup %4357  ;;  %v1086_v0 = vmul.f32 1.442695, %v1071_v58 }
 0x1d1   :  { %v4875_v1 = vpop.eup %4359  ;;  %v1106_v2 = vsel %vm879_vm1, %v4873_v59, 0.0 }
 0x1d2   :  { %4363 = vpow2.f32 %v1086_v0  ;;  %1107 = vadd.xlane.f32.xlu0 %v1106_v2  ;;  %v1100_v3 = vsel %vm879_vm1, %v4875_v1, 0.0  ;;  %v4881_v4 = vpop.eup %4361 }
 0x1d3   :  { %1101 = vadd.xlane.f32.xlu2 %v1100_v3  ;;  %v1103_v7 = vsel %vm879_vm1, %v4881_v4, 0.0 }
 0x1d8   :  { %v4883_v5 = vpop.eup %4363 }
 0x1d9   :  { %v1109_v6 = vsel %vm879_vm1, %v4883_v5, 0.0 }
 0x1da   :  { %1110 = vadd.xlane.f32.xlu1 %v1109_v6  ;;  %1104 = vadd.xlane.f32.xlu0 %v1103_v7 }
 0x229   :  { %v1090_v60 = vpop.xlane.xlu1 %1089 }
 0x22a   :  { %4365 = vrcp.f32 %v1090_v60  ;;  %v1123_v10 = vand.u32 2147483648, %v1090_v60  ;;  %v1121_v12 = vand.u32 2147483647, %v1090_v60  ;;  %vm1117_vm4 = vweird.f32 %v1090_v60 }
 0x22c   :  { %v1124_v62 = vor.u32 1.1754944e-38, %v1123_v10  ;;  %vm1122_vm6 = vcmp.eq.f32.partialorder %v1121_v12, 8.507059e+37 }
 0x230   :  { %v4366_v61 = vpop.eup %4365 }
 0x231   :  { %v1113_v8 = vmul.f32 %v4366_v61, %v1090_v60  ;;  %vm1118_vm3 = vweird.f32 %v4366_v61 }
 0x232   :  { %vm1119_vm5 = vmor %vm1117_vm4, %vm1118_vm3 }
 0x233   :  { %v1114_v9 = vsub.f32 1.0, %v1113_v8 }
 0x235   :  { %v1115_v11 = vmul.f32 %v4366_v61, %v1114_v9  ;;  %v1096_v13 = vpop.xlane.xlu2 %1095 }
 0x236   :  { %4367 = vrcp.f32 %v1096_v13  ;;  %v1153_v23 = vand.u32 2147483648, %v1096_v13  ;;  %v1151_v25 = vand.u32 2147483647, %v1096_v13  ;;  %vm1147_vm8 = vweird.f32 %v1096_v13 }
 0x237   :  { %v1116_v14 = vadd.f32 %v4366_v61, %v1115_v11 }
 0x238   :  { %v1154_v28 = vor.u32 1.1754944e-38, %v1153_v23  ;;  %vm1152_vm10 = vcmp.eq.f32.partialorder %v1151_v25, 8.507059e+37 }
 0x239   :  { %v1120_v63 = vsel %vm1119_vm5, %v4366_v61, %v1116_v14 }
 0x23a   :  { %v1125_v15 = vsel %vm1122_vm6, %v1124_v62, %v1120_v63 }
 0x23b   :  { %v1126_v16 = vmul.f32 %v4857_v31, %v1125_v15 }
 0x23c   :  { %v4368_v17 = vpop.eup %4367 }
 0x23d   :  { %v1143_v18 = vmul.f32 %v4368_v17, %v1096_v13  ;;  %v1093_v19 = vpop.xlane.xlu2 %1092  ;;  %v1099_v20 = vpop.xlane.xlu0 %1098  ;;  %v1232_v21 = vpack.c.bf16 %v1126_v16, %v1126_v16  ;;  %vm1148_vm7 = vweird.f32 %v4368_v17 }
 0x23e   :  { %4369 = vrcp.f32 %v1093_v19  ;;  %vm1149_vm9 = vmor %vm1147_vm8, %vm1148_vm7  ;;  %v1136_v38 = vand.u32 2147483647, %v1093_v19  ;;  %v1138_v39 = vand.u32 2147483648, %v1093_v19  ;;  %v1168_v43 = vand.u32 2147483648, %v1099_v20 }
 0x23f   :  { %v1144_v22 = vsub.f32 1.0, %v1143_v18  ;;  %4371 = vrcp.f32 %v1099_v20  ;;  %3791 = vmatmul.msk.bf16.vlgmr.msra.gmra.mxu0 %vm879_vm1, %v1232_v21  ;;  %v1166_v46 = vand.u32 2147483647, %v1099_v20  ;;  %vm1132_vm13 = vweird.f32 %v1093_v19 }
 0x240   :  { %vm1162_vm15 = vweird.f32 %v1099_v20  ;;  %vm1137_vm3 = vcmp.eq.f32.partialorder %v1136_v38, 8.507059e+37  ;;  %v1169_v54 = vor.u32 1.1754944e-38, %v1168_v43 }
 0x241   :  { %v1145_v24 = vmul.f32 %v4368_v17, %v1144_v22  ;;  %vm1167_vm5 = vcmp.eq.f32.partialorder %v1166_v46, 8.507059e+37 }
 0x243   :  { %v1146_v26 = vadd.f32 %v4368_v17, %v1145_v24 }
 0x244   :  { %v4370_v27 = vpop.eup %4369 }
 0x245   :  { %v4372_v29 = vpop.eup %4371  ;;  %v1150_v30 = vsel %vm1149_vm9, %v4368_v17, %v1146_v26  ;;  %v1128_v31 = vmul.f32 %v4370_v27, %v1093_v19  ;;  %v4891_v32 = vpop.xlane.xlu0 %1107  ;;  %vm1133_vm11 = vweird.f32 %v4370_v27 }
 0x246   :  { %v1155_v33 = vsel %vm1152_vm10, %v1154_v28, %v1150_v30  ;;  %v1158_v34 = vmul.f32 %v4372_v29, %v1099_v20  ;;  %v4893_v35 = vpop.xlane.xlu2 %1101  ;;  %4373 = vrcp.f32 %v4891_v32  ;;  %vm1163_vm12 = vweird.f32 %v4372_v29  ;;  %vm1134_vm14 = vmor %vm1132_vm13, %vm1133_vm11 }
 0x247   :  { %v1156_v36 = vmul.f32 %v4861_v41, %v1155_v33  ;;  %v1129_v37 = vsub.f32 1.0, %v1128_v31  ;;  %4375 = vrcp.f32 %v4893_v35  ;;  %v1139_v41 = vor.u32 1.1754944e-38, %v1138_v39  ;;  %vm1164_vm4 = vmor %vm1162_vm15, %vm1163_vm12 }
 0x248   :  { %v1159_v40 = vsub.f32 1.0, %v1158_v34  ;;  %v1183_v8 = vand.u32 2147483648, %v4893_v35  ;;  %v1213_v9 = vand.u32 2147483648, %v4891_v32  ;;  %v1211_v11 = vand.u32 2147483647, %v4891_v32 }
 0x249   :  { %v1130_v42 = vmul.f32 %v4370_v27, %v1129_v37  ;;  %v1234_v44 = vpack.c.bf16 %v1156_v36, %v1156_v36  ;;  %vm1207_vm8 = vweird.f32 %v4891_v32  ;;  %vm1177_vm9 = vweird.f32 %v4893_v35 }
 0x24a   :  { %v1160_v45 = vmul.f32 %v4372_v29, %v1159_v40  ;;  %v1214_v63 = vor.u32 1.1754944e-38, %v1213_v9  ;;  %v1184_v16 = vor.u32 1.1754944e-38, %v1183_v8  ;;  %vm1212_vm12 = vcmp.eq.f32.partialorder %v1211_v11, 8.507059e+37 }
 0x24b   :  { %v1131_v48 = vadd.f32 %v4370_v27, %v1130_v42  ;;  %3793 = vmatmul.msk.bf16.vlgmr.msra.gmra.mxu2 %vm879_vm1, %v1234_v44 }
 0x24c   :  { %v4374_v49 = vpop.eup %4373  ;;  %v1161_v51 = vadd.f32 %v4372_v29, %v1160_v45 }
 0x24d   :  { %v4376_v52 = vpop.eup %4375  ;;  %v1135_v53 = vsel %vm1134_vm14, %v4370_v27, %v1131_v48  ;;  %v1203_v55 = vmul.f32 %v4374_v49, %v4891_v32  ;;  %v4900_v56 = vpop.xlane.xlu1 %1110  ;;  %vm1208_vm6 = vweird.f32 %v4374_v49  ;;  %v1409_v48 = vld [vmem:[%s5551_s4] sm:$0xf] }
 0x24e   :  { %v1140_v57 = vsel %vm1137_vm3, %v1139_v41, %v1135_v53  ;;  %v1165_v58 = vsel %vm1164_vm4, %v4372_v29, %v1161_v51  ;;  %v1173_v0 = vmul.f32 %v4376_v52, %v4893_v35  ;;  %v4903_v2 = vpop.xlane.xlu0 %1104  ;;  %4377 = vrcp.f32 %v4900_v56  ;;  %vm1209_vm10 = vmor %vm1207_vm8, %vm1208_vm6 }
 0x24f   :  { %v1141_v3 = vmul.f32 %v4865_v47, %v1140_v57  ;;  %v1170_v6 = vsel %vm1167_vm5, %v1169_v54, %v1165_v58  ;;  %v1204_v7 = vsub.f32 1.0, %v1203_v55  ;;  %4379 = vrcp.f32 %v4903_v2  ;;  %v1413_v54 = vld [vmem:[%s5551_s4 + $0x10] sm:$0xf]  ;;  %v1415_v58 = vld [vmem:[%s5551_s4 + $0x18] sm:$0xf] }
 0x250   :  { %v1171_v60 = vmul.f32 %v4867_v50, %v1170_v6  ;;  %v1174_v61 = vsub.f32 1.0, %v1173_v0  ;;  %vm1178_vm7 = vweird.f32 %v4376_v52  ;;  %v1181_v47 = vand.u32 2147483647, %v4893_v35 }
 0x251   :  { %v1205_v10 = vmul.f32 %v4374_v49, %v1204_v7  ;;  %v1233_v14 = vpack.c.bf16 %v1141_v3, %v1141_v3  ;;  %vm1179_vm11 = vmor %vm1177_vm9, %vm1178_vm7  ;;  %v1226_v27 = vand.u32 2147483647, %v4900_v56  ;;  %v1228_v28 = vand.u32 2147483648, %v4900_v56  ;;  %v1416_v7 = vld [vmem:[%s5551_s4 + $0x1c] sm:$0xf] }
 0x252   :  { %v1175_v12 = vmul.f32 %v4376_v52, %v1174_v61  ;;  %v1235_v50 = vpack.c.bf16 %v1171_v60, %v1171_v60  ;;  %vm1182_vm13 = vcmp.eq.f32.partialorder %v1181_v47, 8.507059e+37  ;;  %vm1222_vm15 = vweird.f32 %v4900_v56 }
 0x253   :  { %v1206_v13 = vadd.f32 %v4374_v49, %v1205_v10  ;;  %3792 = vmatmul.msk.bf16.vlgmr.msra.gmra.mxu1 %vm879_vm1, %v1233_v14  ;;  %v1198_v33 = vand.u32 2147483648, %v4903_v2  ;;  %v1196_v34 = vand.u32 2147483647, %v4903_v2  ;;  %v1229_v35 = vor.u32 1.1754944e-38, %v1228_v28 }
 0x254   :  { %v1176_v62 = vadd.f32 %v4376_v52, %v1175_v12  ;;  %v4378_v15 = vpop.eup %4377  ;;  %3794 = vmatmul.msk.bf16.vlgmr.msra.gmra.mxu3 %vm879_vm1, %v1235_v50  ;;  %vm1227_vm5 = vcmp.eq.f32.partialorder %v1226_v27, 8.507059e+37  ;;  %vm1192_vm6 = vweird.f32 %v4903_v2  ;;  %v1497_v55 = vsel %vm1251_vm2, %v1413_v54, 0 }
 0x255   :  { %v1210_v17 = vsel %vm1209_vm10, %v4374_v49, %v1206_v13  ;;  %v1218_v20 = vmul.f32 %v4378_v15, %v4900_v56  ;;  %v4380_v21 = vpop.eup %4379  ;;  %vm1223_vm14 = vweird.f32 %v4378_v15  ;;  %v1199_v39 = vor.u32 1.1754944e-38, %v1198_v33 }
 0x256   :  { %v1180_v18 = vsel %vm1179_vm11, %v4376_v52, %v1176_v62  ;;  %v1215_v19 = vsel %vm1212_vm12, %v1214_v63, %v1210_v17  ;;  %v1188_v26 = vmul.f32 %v4380_v21, %v4903_v2  ;;  %vm1193_vm3 = vweird.f32 %v4380_v21  ;;  %vm1224_vm4 = vmor %vm1222_vm15, %vm1223_vm14  ;;  %v1412_v52 = vld [vmem:[%s5551_s4 + $0xc] sm:$0xf]  ;;  %v1414_v2 = vld [vmem:[%s5551_s4 + $0x14] sm:$0xf] }
 0x257   :  { %v1185_v22 = vsel %vm1182_vm13, %v1184_v16, %v1180_v18  ;;  %v1216_v23 = vmul.f32 %v4873_v59, %v1215_v19  ;;  %v1219_v25 = vsub.f32 1.0, %v1218_v20  ;;  %vm1194_vm7 = vmor %vm1192_vm6, %vm1193_vm3  ;;  %vm1197_vm8 = vcmp.eq.f32.partialorder %v1196_v34, 8.507059e+37 }
 0x258   :  { %v1186_v24 = vmul.f32 %v4875_v1, %v1185_v22  ;;  %v1189_v31 = vsub.f32 1.0, %v1188_v26  ;;  %v1421_v49 = vsel %vm1251_vm2, %v1409_v48, 0  ;;  %v1478_v53 = vsel %vm1251_vm2, %v1412_v52, 0 }
 0x259   :  { %v1238_v29 = vpack.c.bf16 %v1216_v23, %v1216_v23  ;;  %v1220_v30 = vmul.f32 %v4378_v15, %v1219_v25  ;;  %1430 = vmatpush.bf16.msra.mxu0 %v1421_v49  ;;  %1487 = vmatpush.bf16.msra.mxu3 %v1478_v53  ;;  %v1535_v0 = vsel %vm1251_vm2, %v1415_v58, 0  ;;  %v1516_v3 = vsel %vm1251_vm2, %v1414_v2, 0 }
 0x25a   :  { %v1236_v32 = vpack.c.bf16 %v1186_v24, %v1186_v24  ;;  %v1190_v1 = vmul.f32 %v4380_v21, %v1189_v31  ;;  %v1554_v60 = vsel %vm1251_vm2, %v1416_v7, 0  ;;  %v4455_v7 = vmov 32.0  }
 0x25b   :  { %3797 = vmatmul.msk.bf16.vlgmr.msrb.gmra.mxu2 %vm879_vm1, %v1238_v29  ;;  %v1221_v59 = vadd.f32 %v4378_v15, %v1220_v30  ;;  %4381 = vrcp.f32 %v4455_v7  ;;  %v4262_v7 = vld [vmem:[%s5553_s6 + $0x118] sm:$0xff] }
 0x25c   :  { %3795 = vmatmul.msk.bf16.vlgmr.msrb.gmra.mxu0 %vm879_vm1, %v1236_v32  ;;  %v1191_v37 = vadd.f32 %v4380_v21, %v1190_v1 }
 0x25d   :  { %v1225_v36 = vsel %vm1224_vm4, %v4378_v15, %v1221_v59  ;;  %1506 = vmatpush.bf16.msrb.mxu0 %v1497_v55 }
 0x25e   :  { %v1230_v38 = vsel %vm1227_vm5, %v1229_v35, %v1225_v36  ;;  %v1195_v42 = vsel %vm1194_vm7, %v4380_v21, %v1191_v37 }
 0x25f   :  { %v1231_v40 = vmul.f32 %v4883_v5, %v1230_v38  ;;  %v1200_v43 = vsel %vm1197_vm8, %v1199_v39, %v1195_v42  ;;  %v1411_v5 = vld [vmem:[%s5551_s4 + $0x8] sm:$0xf]  ;;  %v4315_v38 = vld [vmem:[%s5552_s5] ss:$0 sm:$0xff] }
 0x260   :  { %v1201_v44 = vmul.f32 %v4881_v4, %v1200_v43  ;;  %v1459_v41 = vsel %vm1251_vm2, %v1411_v5, 0  ;;  %v1410_v4 = vld [vmem:[%s5551_s4 + $0x4] sm:$0xf] }
 0x261   :  { %v1239_v45 = vpack.c.bf16 %v1231_v40, %v1231_v40  ;;  %1468 = vmatpush.bf16.msra.mxu2 %v1459_v41  ;;  %v1440_v51 = vsel %vm1251_vm2, %v1410_v4, 0 }
 0x262   :  { %v1237_v46 = vpack.c.bf16 %v1201_v44, %v1201_v44  ;;  %1449 = vmatpush.bf16.msra.mxu1 %v1440_v51 }
 0x264   :  { %3798 = vmatmul.msk.bf16.vlgmr.msrb.gmra.mxu3 %vm879_vm1, %v1239_v45  ;;  %3796 = vmatmul.msk.bf16.vlgmr.msrb.gmra.mxu1 %vm879_vm1, %v1237_v46  ;;  %v4427_v45 = vld [vmem:[%s5547_s0] sm:$0xff] }
 0x265   :  { %1544 = vmatpush.bf16.msrb.mxu2 %v1535_v0  ;;  %1563 = vmatpush.bf16.msrb.mxu3 %v1554_v60  ;;  %v4231_v60 = vld [vmem:[%s5553_s6 + $0x20] sm:$0xff] }
 0x266   :  { %1525 = vmatpush.bf16.msrb.mxu1 %v1516_v3  ;;  %v4232_v3 = vld [vmem:[%s5553_s6 + $0x28] sm:$0xff] }
 0x2bc   :  { %v1264_v56 = vpop.f32.mrf.mxu0 }
 0x2bd   :  { %v1401_v57 = vpack.c.bf16 %v1264_v56, %v1264_v56 }
 0x2bf   :  { %3799 = vmatmul.msk.bf16.vlgmr.msra.gmra.mxu0 %vm879_vm1, %v1401_v57  ;;  %v4428_v57 = vld [vmem:[%s5547_s0 + $0x8] sm:$0xff] }
 0x2c4   :  { %v1266_v6 = vpop.f32.mrf.mxu0 }
 0x2c5   :  { %v4234_v6 = vld [vmem:[%s5553_s6 + $0x38] sm:$0xff] }
 0x2ce   :  { %v1302_v61 = vpop.f32.mrf.mxu2 }
 0x2cf   :  { %v1403_v8 = vpack.c.bf16 %v1302_v61, %v1302_v61  ;;  %v4233_v61 = vld [vmem:[%s5553_s6 + $0x30] sm:$0xff] }
 0x2d0   :  { %v1283_v9 = vpop.f32.mrf.mxu1 }
 0x2d1   :  { %3801 = vmatmul.msk.bf16.vlgmr.msra.gmra.mxu2 %vm879_vm1, %v1403_v8  ;;  %v1402_v10 = vpack.c.bf16 %v1283_v9, %v1283_v9  ;;  %v4382_v8 = vpop.eup %4381  ;;  %v4228_v9 = vld [vmem:[%s5553_s6 + $0x8] sm:$0xff] }
 0x2d2   :  { %1790 = vmatpush.bf16.msra.mxu2 %v4232_v3  ;;  %1737 = vmatpush.bf16.msra.mxu0 %v4228_v9  ;;  %vm1604_vm9 = vweird.f32 %v4382_v8 }
 0x2d3   :  { %3800 = vmatmul.msk.bf16.vlgmr.msra.gmra.mxu1 %vm879_vm1, %v1402_v10  ;;  %v56_v10 = vld [vmem:[%s5548_s1] sm:$0xff] }
 0x2d6   :  { %v1304_v11 = vpop.f32.mrf.mxu2  ;;  %1791 = vmatpush.bf16.msra.mxu2 %v4231_v60  ;;  %v4266_v60 = vld [vmem:[%s5553_s6 + $0x138] sm:$0xff] }
 0x2d7   :  { %v1321_v12 = vpop.f32.mrf.mxu3  ;;  %v57_v11 = vld [vmem:[%s5548_s1 + $0x8] sm:$0xff] }
 0x2d8   :  { %v1404_v47 = vpack.c.bf16 %v1321_v12, %v1321_v12  ;;  %v1285_v14 = vpop.f32.mrf.mxu1  ;;  %v5019_v12 = vpack.c.bf16 %v56_v10, %v56_v10  ;;  %v4261_v10 = vld [vmem:[%s5553_s6 + $0x110] sm:$0xff] }
 0x2d9   :  { %v1340_v13 = vpop.f32.mrf.mxu0  ;;  %v1600_v14 = vmul.f32 32.0, %v4382_v8 }
 0x2da   :  { %v1405_v50 = vpack.c.bf16 %v1340_v13, %v1340_v13  ;;  %3802 = vmatmul.msk.bf16.vlgmr.msra.gmra.mxu3 %vm879_vm1, %v1404_v47  ;;  %v5021_v47 = vpack.c.bf16 %v57_v11, %v57_v11  ;;  %v4227_v13 = vld [vmem:[%s5553_s6] sm:$0xff]  ;;  %v4265_v11 = vld [vmem:[%s5553_s6 + $0x130] sm:$0xff] }
 0x2db   :  { %1815 = vmatpush.bf16.msra.mxu3 %v4234_v6  ;;  %1738 = vmatpush.bf16.msra.mxu0 %v4227_v13  ;;  %v4268_v13 = vld [vmem:[%s5553_s6 + $0x148] sm:$0xff] }
 0x2dc   :  { %3803 = vmatmul.msk.bf16.vlgmr.msrb.gmra.mxu0 %vm879_vm1, %v1405_v50  ;;  %v1601_v50 = vsub.f32 1.0, %v1600_v14  ;;  %v4272_v14 = vld [vmem:[%s5553_s6 + $0x168] sm:$0xff] }
 0x2de   :  { %v1378_v62 = vpop.f32.mrf.mxu2 }
 0x2df   :  { %v1407_v63 = vpack.c.bf16 %v1378_v62, %v1378_v62  ;;  %v1323_v15 = vpop.f32.mrf.mxu3  ;;  %1816 = vmatpush.bf16.msra.mxu3 %v4233_v61  ;;  %v4230_v62 = vld [vmem:[%s5553_s6 + $0x18] sm:$0xff] }
 0x2e0   :  { %v4242_v15 = vld [vmem:[%s5553_s6 + $0x78] sm:$0xff]  ;;  %1765 = vmatpush.bf16.msra.mxu1 %v4230_v62 }
 0x2e1   :  { %v1342_v16 = vpop.f32.mrf.mxu0  ;;  %3805 = vmatmul.msk.bf16.vlgmr.msrb.gmra.mxu2 %vm879_vm1, %v1407_v63  ;;  %v1359_v17 = vpop.f32.mrf.mxu1  ;;  %v4240_v63 = vld [vmem:[%s5553_s6 + $0x68] sm:$0xff] }
 0x2e2   :  { %v1406_v18 = vpack.c.bf16 %v1359_v17, %v1359_v17  ;;  %v4229_v16 = vld [vmem:[%s5553_s6 + $0x10] sm:$0xff]  ;;  %v4236_v17 = vld [vmem:[%s5553_s6 + $0x48] sm:$0xff]  ;;  %1890 = vmatpush.bf16.msrb.mxu2 %v4240_v63 }
 0x2e3   :  { %1840 = vmatpush.bf16.msrb.mxu0 %v4236_v17  ;;  %v4271_v17 = vld [vmem:[%s5553_s6 + $0x160] sm:$0xff] }
 0x2e4   :  { %3804 = vmatmul.msk.bf16.vlgmr.msrb.gmra.mxu1 %vm879_vm1, %v1406_v18  ;;  %v4239_v18 = vld [vmem:[%s5553_s6 + $0x60] sm:$0xff] }
 0x2e5   :  { %1766 = vmatpush.bf16.msra.mxu1 %v4229_v16 }
 0x2e6   :  { %v1380_v19 = vpop.f32.mrf.mxu2  ;;  %1891 = vmatpush.bf16.msrb.mxu2 %v4239_v18 }
 0x2e7   :  { %v1397_v20 = vpop.f32.mrf.mxu3  ;;  %v4241_v19 = vld [vmem:[%s5553_s6 + $0x70] sm:$0xff] }
 0x2e8   :  { %v1408_v21 = vpack.c.bf16 %v1397_v20, %v1397_v20  ;;  %v1602_v20 = vmul.f32 %v4382_v8, %v1601_v50 }
 0x2e9   :  { %v1361_v22 = vpop.f32.mrf.mxu1 }
 0x2ea   :  { %3806 = vmatmul.msk.bf16.vlgmr.msrb.gmra.mxu3 %vm879_vm1, %v1408_v21  ;;  %v4235_v21 = vld [vmem:[%s5553_s6 + $0x40] sm:$0xff]  ;;  %v4238_v22 = vld [vmem:[%s5553_s6 + $0x58] sm:$0xff] }
 0x2eb   :  { %1915 = vmatpush.bf16.msrb.mxu3 %v4242_v15  ;;  %1841 = vmatpush.bf16.msrb.mxu0 %v4235_v21  ;;  %v4267_v15 = vld [vmem:[%s5553_s6 + $0x140] sm:$0xff] }
 0x2ec   :  { %3815 = vmatmul.msk.bf16.vlgmr.msra.gmra.mxu0 %vm136_vm0, %v5019_v12  ;;  %1865 = vmatpush.bf16.msrb.mxu1 %v4238_v22 }
 0x2ef   :  { %v1399_v23 = vpop.f32.mrf.mxu3  ;;  %1916 = vmatpush.bf16.msrb.mxu3 %v4241_v19 }
 0x2f0   :  { %v4248_v23 = vld [vmem:[%s5553_s6 + $0xa8] sm:$0xff] }
 0x2f1   :  { %3833 = vmatmul.msk.bf16.vlgmr.msra.gmra.mxu2 %vm136_vm0, %v5019_v12 }
 0x2f2   :  { %2056 = vmatpush.bf16.msra.mxu2 %v4248_v23 }
 0x2f4   :  { %3824 = vmatmul.msk.bf16.vlgmr.msra.gmra.mxu1 %vm136_vm0, %v5021_v47 }
 0x2fa   :  { %3842 = vmatmul.msk.bf16.vlgmr.msra.gmra.mxu3 %vm136_vm0, %v5021_v47 }
 0x2fc   :  { %3851 = vmatmul.msk.bf16.vlgmr.msrb.gmra.mxu0 %vm136_vm0, %v5019_v12 }
 0x301   :  { %3869 = vmatmul.msk.bf16.vlgmr.msrb.gmra.mxu2 %vm136_vm0, %v5019_v12 }
 0x30a   :  { %3878 = vmatmul.msk.bf16.vlgmr.msrb.gmra.mxu3 %vm136_vm0, %v5021_v47 }
 0x33c   :  { %v1432_v24 = vpop.f32.mrf.mxu0 }
 0x33d   :  { %v1569_v33 = vsel %vm136_vm0, %v1432_v24, 0.0  ;;  %v4250_v24 = vld [vmem:[%s5553_s6 + $0xb8] sm:$0xff] }
 0x33e   :  { %2081 = vmatpush.bf16.msra.mxu3 %v4250_v24  ;;  %v4270_v24 = vld [vmem:[%s5553_s6 + $0x158] sm:$0xff] }
 0x344   :  { %v1434_v25 = vpop.f32.mrf.mxu0 }
 0x345   :  { %v4244_v25 = vld [vmem:[%s5553_s6 + $0x88] sm:$0xff] }
 0x346   :  { %2006 = vmatpush.bf16.msra.mxu0 %v4244_v25  ;;  %v4274_v25 = vld [vmem:[%s5553_s6 + $0x178] sm:$0xff] }
 0x350   :  { %v1451_v26 = vpop.f32.mrf.mxu1 }
 0x351   :  { %v1576_v48 = vsel %vm136_vm0, %v1451_v26, 0.0  ;;  %v1603_v26 = vadd.f32 %v4382_v8, %v1602_v20 }
 0x354   :  { %v1470_v27 = vpop.f32.mrf.mxu2 }
 0x355   :  { %v1570_v32 = vsel %vm136_vm0, %v1470_v27, 0.0  ;;  %v4237_v27 = vld [vmem:[%s5553_s6 + $0x50] sm:$0xff] }
 0x356   :  { %v1571_v34 = vadd.f32 %v1570_v32, %v1569_v33  ;;  %v4256_v32 = vld [vmem:[%s5553_s6 + $0xe8] sm:$0xff]  ;;  %v5088_v33 = vsel %vm1604_vm9, %v4382_v8, %v1603_v26  ;;  %1866 = vmatpush.bf16.msrb.mxu1 %v4237_v27  ;;  %v4269_v27 = vld [vmem:[%s5553_s6 + $0x150] sm:$0xff] }
 0x358   :  { %v1453_v29 = vpop.f32.mrf.mxu1 }
 0x359   :  { %v1508_v28 = vpop.f32.mrf.mxu0  ;;  %v4249_v29 = vld [vmem:[%s5553_s6 + $0xb0] sm:$0xff]  ;;  %3860 = vmatmul.msk.bf16.vlgmr.msrb.gmra.mxu1 %vm136_vm0, %v5021_v47 }
 0x35a   :  { %v1572_v59 = vsel %vm136_vm0, %v1508_v28, 0.0  ;;  %v4247_v28 = vld [vmem:[%s5553_s6 + $0xa0] sm:$0xff]  ;;  %2082 = vmatpush.bf16.msra.mxu3 %v4249_v29 }
 0x35b   :  { %v1573_v36 = vadd.f32 %v1572_v59, %v1571_v34  ;;  %v4258_v59 = vld [vmem:[%s5553_s6 + $0xf8] sm:$0xff]  ;;  %2057 = vmatpush.bf16.msra.mxu2 %v4247_v28  ;;  %v4273_v28 = vld [vmem:[%s5553_s6 + $0x170] sm:$0xff] }
 0x35c   :  { %v1472_v30 = vpop.f32.mrf.mxu2 }
 0x35d   :  { %v1489_v31 = vpop.f32.mrf.mxu3  ;;  %v4243_v30 = vld [vmem:[%s5553_s6 + $0x80] sm:$0xff]  ;;  %3954 = vmatmul.msk.bf16.vlgmr.msra.gmra.mxu3 %vm136_vm0, %v5021_v47 }
 0x35e   :  { %v1577_v44 = vsel %vm136_vm0, %v1489_v31, 0.0  ;;  %v4246_v31 = vld [vmem:[%s5553_s6 + $0x98] sm:$0xff]  ;;  %2007 = vmatpush.bf16.msra.mxu0 %v4243_v30  ;;  %2181 = vmatpush.bf16.msrb.mxu3 %v4258_v59  ;;  %v4326_v30 = vld [vmem:[%s5554_s7 + $0x8] ss:$0 sm:$0xff] }
 0x35f   :  { %v1578_v41 = vadd.f32 %v1577_v44, %v1576_v48  ;;  %2031 = vmatpush.bf16.msra.mxu1 %v4246_v31  ;;  %2156 = vmatpush.bf16.msrb.mxu2 %v4256_v32  ;;  %v4254_v44 = vld [vmem:[%s5553_s6 + $0xd8] sm:$0xff]  ;;  %v4253_v48 = vld [vmem:[%s5553_s6 + $0xd0] sm:$0xff]  ;;  %v4327_v32 = vld [vmem:[%s5554_s7 + $0xa] ss:$0 sm:$0xff] }
 0x360   :  { %3945 = vmatmul.msk.bf16.vlgmr.msra.gmra.mxu2 %vm136_vm0, %v5019_v12 }
 0x361   :  { %v1510_v1 = vpop.f32.mrf.mxu0  ;;  %v1527_v35 = vpop.f32.mrf.mxu1  ;;  %3927 = vmatmul.msk.bf16.vlgmr.msra.gmra.mxu0 %vm136_vm0, %v5019_v12 }
 0x362   :  { %v1579_v49 = vsel %vm136_vm0, %v1527_v35, 0.0  ;;  %v4245_v35 = vld [vmem:[%s5553_s6 + $0x90] sm:$0xff] }
 0x363   :  { %v1580_v52 = vadd.f32 %v1579_v49, %v1578_v41  ;;  %2032 = vmatpush.bf16.msra.mxu1 %v4245_v35 }
 0x364   :  { %v1546_v37 = vpop.f32.mrf.mxu2 }
 0x365   :  { %v1574_v39 = vsel %vm136_vm0, %v1546_v37, 0.0  ;;  %v1491_v40 = vpop.f32.mrf.mxu3  ;;  %v4257_v37 = vld [vmem:[%s5553_s6 + $0xf0] sm:$0xff] }
 0x366   :  { %v1575_v42 = vadd.f32 %v1574_v39, %v1573_v36  ;;  %v4255_v36 = vld [vmem:[%s5553_s6 + $0xe0] sm:$0xff]  ;;  %2182 = vmatpush.bf16.msrb.mxu3 %v4257_v37 }
 0x367   :  { %2157 = vmatpush.bf16.msrb.mxu2 %v4255_v36  ;;  %2131 = vmatpush.bf16.msrb.mxu1 %v4254_v44 }
 0x368   :  { %v1587_v43 = vadd.f32 %v4315_v38, %v1575_v42  ;;  %v4251_v42 = vld [vmem:[%s5553_s6 + $0xc0] sm:$0xff] }
 0x369   :  { %v1529_v5 = vpop.f32.mrf.mxu1  ;;  %3936 = vmatmul.msk.bf16.vlgmr.msra.gmra.mxu1 %vm136_vm0, %v5021_v47 }
 0x36a   :  { %v4984_v46 = vadd.f32 %v4427_v45, %v1587_v43  ;;  %2353 = vmatpush.bf16.msra.mxu3 %v4266_v60 }
 0x36b   :  { %2132 = vmatpush.bf16.msrb.mxu1 %v4253_v48 }
 0x36c   :  { %v1548_v4 = vpop.f32.mrf.mxu2  ;;  %v1593_v51 = vsel %vm136_vm0, %v4984_v46, 0.0 }
 0x36d   :  { %1594 = vadd.xlane.f32.xlu1 %v1593_v51  ;;  %v1565_v53 = vpop.f32.mrf.mxu3  ;;  %3990 = vmatmul.msk.bf16.vlgmr.msrb.gmra.mxu3 %vm136_vm0, %v5021_v47  ;;  %v5152_v4 = vpop.f32.mrf.mxu0 }
 0x36e   :  { %v1581_v54 = vsel %vm136_vm0, %v1565_v53, 0.0  ;;  %v4260_v53 = vld [vmem:[%s5553_s6 + $0x108] sm:$0xff]  ;;  %2354 = vmatpush.bf16.msra.mxu3 %v4265_v11 }
 0x36f   :  { %v1582_v55 = vadd.f32 %v1581_v54, %v1580_v52  ;;  %v4264_v54 = vld [vmem:[%s5553_s6 + $0x128] sm:$0xff]  ;;  %2303 = vmatpush.bf16.msra.mxu1 %v4262_v7 }
 0x370   :  { %3981 = vmatmul.msk.bf16.vlgmr.msrb.gmra.mxu2 %vm136_vm0, %v5019_v12 }
 0x371   :  { %v1588_v56 = vadd.f32 %v4315_v38, %v1582_v55  ;;  %v4252_v38 = vld [vmem:[%s5553_s6 + $0xc8] sm:$0xff]  ;;  %2328 = vmatpush.bf16.msra.mxu2 %v4264_v54 }
 0x372   :  { %2106 = vmatpush.bf16.msrb.mxu0 %v4252_v38  ;;  %2453 = vmatpush.bf16.msrb.mxu3 %v4274_v25  ;;  %v4317_v38 = vld [vmem:[%s5561_s14 + $0x1] ss:$0 sm:$0xff] }
 0x373   :  { %v4994_v58 = vadd.f32 %v4428_v57, %v1588_v56  ;;  %v5164_v56 = vpop.f32.mrf.mxu1  ;;  %v4259_v57 = vld [vmem:[%s5553_s6 + $0x100] sm:$0xff]  ;;  %2304 = vmatpush.bf16.msra.mxu1 %v4261_v10 }
 0x374   :  { %v5154_v51 = vpop.f32.mrf.mxu2 }
 0x375   :  { %v1567_v0 = vpop.f32.mrf.mxu3  ;;  %v1596_v2 = vsel %vm136_vm0, %v4994_v58, 0.0  ;;  %v1742_v55 = vpop.f32.mrf.mxu0 }
 0x376   :  { %1597 = vadd.xlane.f32.xlu2 %v1596_v2  ;;  %2107 = vmatpush.bf16.msrb.mxu0 %v4251_v42  ;;  %v4328_v55 = vld [vmem:[%s5554_s7 + $0xb] ss:$0 sm:$0xff] }
 0x377   :  { %2454 = vmatpush.bf16.msrb.mxu3 %v4273_v28  ;;  %v4332_v28 = vld [vmem:[%s5554_s7 + $0xf] ss:$0 sm:$0xff] }
 0x379   :  { %3963 = vmatmul.msk.bf16.vlgmr.msrb.gmra.mxu0 %vm136_vm0, %v5019_v12  ;;  %3972 = vmatmul.msk.bf16.vlgmr.msrb.gmra.mxu1 %vm136_vm0, %v5021_v47 }
 0x37a   :  { %2275 = vmatpush.bf16.msra.mxu0 %v4260_v53  ;;  %2403 = vmatpush.bf16.msrb.mxu1 %v4270_v24 }
 0x37b   :  { %v1770_v8 = vpop.f32.mrf.mxu1 }
 0x37c   :  { %v1795_v0 = vpop.f32.mrf.mxu2 }
 0x37d   :  { %v5156_v52 = vpop.f32.mrf.mxu3  ;;  %v5179_v9 = vpop.f32.mrf.mxu0 }
 0x37e   :  { %2276 = vmatpush.bf16.msra.mxu0 %v4259_v57  ;;  %2404 = vmatpush.bf16.msrb.mxu1 %v4269_v27  ;;  %v4329_v57 = vld [vmem:[%s5554_s7 + $0x9] ss:$0 sm:$0xff] }
 0x382   :  { %2378 = vmatpush.bf16.msrb.mxu0 %v4268_v13 }
 0x384   :  { %v5187_v12 = vpop.f32.mrf.mxu2 }
 0x385   :  { %v1820_v2 = vpop.f32.mrf.mxu3  ;;  %v1845_v20 = vpop.f32.mrf.mxu0 }
 0x386   :  { %2379 = vmatpush.bf16.msrb.mxu0 %v4267_v15  ;;  %v4331_v15 = vld [vmem:[%s5554_s7 + $0xe] ss:$0 sm:$0xff] }
 0x38c   :  { %v1895_v22 = vpop.f32.mrf.mxu2 }
 0x38d   :  { %v5189_v47 = vpop.f32.mrf.mxu3 }
 0x395   :  { %v1920_v23 = vpop.f32.mrf.mxu3 }
 0x3d6   :  { %v5204_v21 = vpop.f32.mrf.mxu1 }
 0x3de   :  { %v1870_v36 = vpop.f32.mrf.mxu1  ;;  %v2009_v37 = vpop.f32.mrf.mxu0 }
 0x3df   :  { %v2010_v42 = vadd.f32 %v4326_v30, %v2009_v37 }
 0x3e0   :  { %v1595_v1 = vpop.xlane.xlu1 %1594  ;;  %v2084_v44 = vpop.f32.mrf.mxu3 }
 0x3e1   :  { %v1606_v34 = vmul.f32 %v5088_v33, %v1595_v1  ;;  %v4316_v1 = vld [vmem:[%s5561_s14] ss:$0 sm:$0xff]  ;;  %v2085_v60 = vadd.f32 %v4328_v55, %v2084_v44  ;;  %v4321_v55 = vld [vmem:[%s5554_s7 + $0x1] ss:$0 sm:$0xff] }
 0x3e3   :  { %v5111_v39 = vsub.f32 %v4984_v46, %v1606_v34 }
 0x3e5   :  { %v1610_v40 = vmul.f32 %v5111_v39, %v5111_v39 }
 0x3e6   :  { %v2034_v7 = vpop.f32.mrf.mxu1 }
 0x3e7   :  { %v1612_v43 = vsel %vm136_vm0, %v1610_v40, 0.0 }
 0x3e8   :  { %1613 = vadd.xlane.f32.xlu0 %v1612_v43  ;;  %v2059_v43 = vpop.f32.mrf.mxu2  ;;  %v2086_v10 = vpop.f32.mrf.mxu3 }
 0x3e9   :  { %v1598_v45 = vpop.xlane.xlu2 %1597 }
 0x3ea   :  { %v1607_v46 = vmul.f32 %v5088_v33, %v1598_v45 }
 0x3ec   :  { %v5131_v49 = vsub.f32 %v4994_v58, %v1607_v46  ;;  %v4263_v58 = vld [vmem:[%s5553_s6 + $0x120] sm:$0xff]  ;;  %v2060_v46 = vadd.f32 %v4327_v32, %v2059_v43 }
 0x3ed   :  { %2329 = vmatpush.bf16.msra.mxu2 %v4263_v58 }
 0x3ee   :  { %v1611_v5 = vmul.f32 %v5131_v49, %v5131_v49  ;;  %v2470_v53 = vpack.c.bf16 %v2060_v46, %v2060_v46 }
 0x3f0   :  { %v1615_v41 = vsel %vm136_vm0, %v1611_v5, 0.0  ;;  %v2468_v5 = vpack.c.bf16 %v2010_v42, %v2010_v42  ;;  %v2518_v2 = vsel %vm879_vm1, %v2470_v53, 0  ;;  %v2061_v8 = vpop.f32.mrf.mxu2  ;;  %v2184_v24 = vpop.f32.mrf.mxu3  ;;  %v4319_v42 = vld [vmem:[%s5554_s7 + $0x2] ss:$0 sm:$0xff]  ;;  %v4320_v53 = vld [vmem:[%s5554_s7 + $0x3] ss:$0 sm:$0xff] }
 0x3f1   :  { %1616 = vadd.xlane.f32.xlu1 %v1615_v41  ;;  %2428 = vmatpush.bf16.msrb.mxu2 %v4272_v14  ;;  %v4334_v8 = vld [vmem:[%s5554_s7 + $0x10] ss:$0 sm:$0xff] }
 0x3f2   :  { %v2480_v0 = vsel %vm879_vm1, %v2468_v5, 0 }
 0x3f5   :  { %2429 = vmatpush.bf16.msrb.mxu2 %v4271_v17  ;;  %v2036_v17 = vpop.f32.mrf.mxu1 }
 0x3f8   :  { %v2159_v23 = vpop.f32.mrf.mxu2  ;;  %v2186_v36 = vpop.f32.mrf.mxu3 }
 0x3f9   :  { %v2160_v25 = vadd.f32 %v4331_v15, %v2159_v23  ;;  %v4340_v36 = vld [vmem:[%s5554_s7 + $0x15] ss:$0 sm:$0xff] }
 0x3fb   :  { %v2474_v27 = vpack.c.bf16 %v2160_v25, %v2160_v25 }
 0x3fd   :  { %v2134_v32 = vpop.f32.mrf.mxu1 }
 0x405   :  { %v2136_v43 = vpop.f32.mrf.mxu1 }
 0x45b   :  { %v1614_v3 = vpop.xlane.xlu0 %1613 }
 0x45c   :  { %v1618_v6 = vmul.f32 %v1614_v3, %v5088_v33 }
 0x45e   :  { %v1620_v61 = vadd.f32 1e-05, %v1618_v6  ;;  %v2011_v6 = vpop.f32.mrf.mxu0 }
 0x45f   :  { %v4324_v6 = vld [vmem:[%s5554_s7 + $0x7] ss:$0 sm:$0xff] }
 0x460   :  { %4383 = vrsqrt.f32 %v1620_v61  ;;  %vm1628_vm11 = vweird.f32 %v1620_v61 }
 0x464   :  { %v1617_v50 = vpop.xlane.xlu1 %1616 }
 0x465   :  { %v1619_v63 = vmul.f32 %v1617_v50, %v5088_v33  ;;  %v2471_v50 = vpack.c.bf16 %v2085_v60, %v2085_v60 }
 0x466   :  { %v4384_v62 = vpop.eup %4383 }
 0x467   :  { %v1623_v16 = vmul.f32 %v4384_v62, %v1620_v61  ;;  %v1621_v18 = vadd.f32 1e-05, %v1619_v63  ;;  %vm1629_vm10 = vweird.f32 %v4384_v62  ;;  %v2035_v61 = vadd.f32 %v4329_v57, %v2034_v7  ;;  %v4330_v63 = vld [vmem:[%s5554_s7 + $0xc] ss:$0 sm:$0xff]  ;;  %v4322_v57 = vld [vmem:[%s5554_s7 + $0x4] ss:$0 sm:$0xff] }
 0x468   :  { %vm1630_vm12 = vmor %vm1628_vm11, %vm1629_vm10  ;;  %v4325_v7 = vld [vmem:[%s5554_s7 + $0x5] ss:$0 sm:$0xff] }
 0x469   :  { %v1624_v19 = vmul.f32 %v4384_v62, %v1623_v16  ;;  %4385 = vrsqrt.f32 %v1621_v18  ;;  %vm1638_vm14 = vweird.f32 %v1621_v18 }
 0x46b   :  { %v1625_v26 = vmul.f32 0.5, %v1624_v19 }
 0x46d   :  { %v1626_v29 = vsub.f32 1.5, %v1625_v26 }
 0x46f   :  { %v1627_v31 = vmul.f32 %v4384_v62, %v1626_v29  ;;  %v4386_v59 = vpop.eup %4385  ;;  %v4333_v29 = vld [vmem:[%s5554_s7 + $0xd] ss:$0 sm:$0xff] }
 0x470   :  { %v1633_v35 = vmul.f32 %v4386_v59, %v1621_v18  ;;  %vm1639_vm13 = vweird.f32 %v4386_v59  ;;  %v2109_v18 = vpop.f32.mrf.mxu0 }
 0x471   :  { %v1631_v34 = vsel %vm1630_vm12, %v4384_v62, %v1627_v31  ;;  %vm1640_vm15 = vmor %vm1638_vm14, %vm1639_vm13  ;;  %v2469_v62 = vpack.c.bf16 %v2035_v61, %v2035_v61  ;;  %v2110_v22 = vadd.f32 %v4330_v63, %v2109_v18  ;;  %v2594_v31 = vsel %vm879_vm1, %v2474_v27, 0 }
 0x472   :  { %v1642_v40 = vmul.f32 %v1631_v34, %v5111_v39  ;;  %v1634_v45 = vmul.f32 %v4386_v59, %v1633_v35  ;;  %v2135_v34 = vadd.f32 %v4333_v29, %v2134_v32  ;;  %v2161_v35 = vpop.f32.mrf.mxu2  ;;  %v4339_v32 = vld [vmem:[%s5554_s7 + $0x16] ss:$0 sm:$0xff] }
 0x473   :  { %v2499_v20 = vsel %vm879_vm1, %v2469_v62, 0  ;;  %v2472_v26 = vpack.c.bf16 %v2110_v22, %v2110_v22  ;;  %v4336_v62 = vld [vmem:[%s5554_s7 + $0x11] ss:$0 sm:$0xff]  ;;  %v4338_v22 = vld [vmem:[%s5554_s7 + $0x14] ss:$0 sm:$0xff] }
 0x474   :  { %v1645_v48 = vmul.f32 %v4316_v1, %v1642_v40  ;;  %v1635_v41 = vmul.f32 0.5, %v1634_v45  ;;  %v4318_v40 = vld [vmem:[%s5554_s7] ss:$0 sm:$0xff] }
 0x475   :  { %v2556_v30 = vsel %vm879_vm1, %v2472_v26, 0  ;;  %v1741_v46 = vadd.f32 %v4318_v40, %v5152_v4  ;;  %v1819_v4 = vadd.f32 %v4320_v53, %v5156_v52 }
 0x476   :  { %v5231_v54 = vadd.f32 %v4317_v38, %v1645_v48  ;;  %v1636_v39 = vsub.f32 1.5, %v1635_v41  ;;  %v1794_v48 = vadd.f32 %v4319_v42, %v5154_v51  ;;  %v1769_v51 = vadd.f32 %v4321_v55, %v5164_v56 }
 0x477   :  { %v2460_v5 = vpack.c.bf16 %v1741_v46, %v1741_v46  ;;  %v4341_v46 = vld [vmem:[%s5554_s7 + $0x17] ss:$0 sm:$0xff] }
 0x478   :  { %v1650_v58 = vpack.c.bf16 %v5231_v54, %v5231_v54  ;;  %v1637_v3 = vmul.f32 %v4386_v59, %v1636_v39  ;;  %v2462_v41 = vpack.c.bf16 %v1794_v48, %v1794_v48  ;;  %v4323_v39 = vld [vmem:[%s5554_s7 + $0x6] ss:$0 sm:$0xff] }
 0x47a   :  { %4039 = vmatmul.msk.bf16.vlgmr.msra.gmra.mxu0 %vm136_vm0, %v1650_v58  ;;  %4057 = vmatmul.msk.bf16.vlgmr.msra.gmra.mxu2 %vm136_vm0, %v1650_v58  ;;  %v1641_v11 = vsel %vm1640_vm15, %v4386_v59, %v1637_v3  ;;  %v2111_v59 = vpop.f32.mrf.mxu0  ;;  %v1894_v3 = vadd.f32 %v4323_v39, %v5187_v12  ;;  %v1869_v12 = vadd.f32 %v4325_v7, %v5204_v21 }
 0x47b   :  { %2489 = vmatpush.bf16.xpose.msra.mxu0 %v2480_v0  ;;  %2527 = vmatpush.bf16.xpose.msra.mxu2 %v2518_v2  ;;  %v1643_v13 = vmul.f32 %v1641_v11, %v5131_v49  ;;  %v2537_v49 = vsel %vm879_vm1, %v2471_v50, 0  ;;  %v2461_v0 = vpack.c.bf16 %v1769_v51, %v1769_v51  ;;  %v1844_v2 = vadd.f32 %v4322_v57, %v5179_v9 }
 0x47c   :  { %v2466_v56 = vpack.c.bf16 %v1894_v3, %v1894_v3  ;;  %v1919_v9 = vadd.f32 %v4324_v6, %v5189_v47  ;;  %v2465_v61 = vpack.c.bf16 %v1869_v12, %v1869_v12 }
 0x47d   :  { %v1646_v14 = vmul.f32 %v4316_v1, %v1643_v13  ;;  %v2185_v1 = vadd.f32 %v4332_v28, %v2184_v24  ;;  %v2464_v52 = vpack.c.bf16 %v1844_v2, %v1844_v2 }
 0x47e   :  { %v2467_v60 = vpack.c.bf16 %v1919_v9, %v1919_v9 }
 0x47f   :  { %v5252_v16 = vadd.f32 %v4317_v38, %v1646_v14  ;;  %v2475_v37 = vpack.c.bf16 %v2185_v1, %v2185_v1  ;;  %v2473_v38 = vpack.c.bf16 %v2135_v34, %v2135_v34  ;;  %v4335_v14 = vld [vmem:[%s5554_s7 + $0x12] ss:$0 sm:$0xff] }
 0x481   :  { %v1651_v19 = vpack.c.bf16 %v5252_v16, %v5252_v16  ;;  %v2613_v44 = vsel %vm879_vm1, %v2475_v37, 0  ;;  %v2575_v45 = vsel %vm879_vm1, %v2473_v38, 0 }
 0x483   :  { %4048 = vmatmul.msk.bf16.vlgmr.msra.gmra.mxu1 %vm136_vm0, %v1651_v19  ;;  %4066 = vmatmul.msk.bf16.vlgmr.msra.gmra.mxu3 %vm136_vm0, %v1651_v19 }
 0x484   :  { %2508 = vmatpush.bf16.xpose.msra.mxu1 %v2499_v20  ;;  %2546 = vmatpush.bf16.xpose.msra.mxu3 %v2537_v49  ;;  %v4337_v20 = vld [vmem:[%s5554_s7 + $0x13] ss:$0 sm:$0xff]  ;;  %s4456_s7 = smov [#allocation2]  }
 0x485   :  { %s3473_s16 = sshll.u32 %s4456_s7, 4  ;;  %s3474_s16 = int_to_ptr.vmem [resolvable:$true] %s3473_s16 }
 0x48a   :  { %4075 = vmatmul.msk.bf16.vlgmr.msrb.gmra.mxu0 %vm136_vm0, %v1650_v58  ;;  %4093 = vmatmul.msk.bf16.vlgmr.msrb.gmra.mxu2 %vm136_vm0, %v1650_v58  ;;  %v2463_v58 = vpack.c.bf16 %v1819_v4, %v1819_v4 }
 0x48b   :  { %2565 = vmatpush.bf16.xpose.msrb.mxu0 %v2556_v30  ;;  %2603 = vmatpush.bf16.xpose.msrb.mxu2 %v2594_v31 }
 0x493   :  { %4084 = vmatmul.msk.bf16.vlgmr.msrb.gmra.mxu1 %vm136_vm0, %v1651_v19  ;;  %4102 = vmatmul.msk.bf16.vlgmr.msrb.gmra.mxu3 %vm136_vm0, %v1651_v19 }
 0x494   :  { %2584 = vmatpush.bf16.xpose.msrb.mxu1 %v2575_v45  ;;  %2622 = vmatpush.bf16.xpose.msrb.mxu3 %v2613_v44 }
 0x49a   :  { %4103 = vmatmul.msk.bf16.vlgmr.msra.gmra.mxu0 %vm879_vm1, %v2460_v5  ;;  %4105 = vmatmul.msk.bf16.vlgmr.msra.gmra.mxu2 %vm879_vm1, %v2462_v41 }
 0x4a3   :  { %4104 = vmatmul.msk.bf16.vlgmr.msra.gmra.mxu1 %vm879_vm1, %v2461_v0  ;;  %4106 = vmatmul.msk.bf16.vlgmr.msra.gmra.mxu3 %vm879_vm1, %v2463_v58 }
 0x4aa   :  { %4107 = vmatmul.msk.bf16.vlgmr.msrb.gmra.mxu0 %vm879_vm1, %v2464_v52  ;;  %4109 = vmatmul.msk.bf16.vlgmr.msrb.gmra.mxu2 %vm879_vm1, %v2466_v56 }
 0x4b3   :  { %4108 = vmatmul.msk.bf16.vlgmr.msrb.gmra.mxu1 %vm879_vm1, %v2465_v61  ;;  %4110 = vmatmul.msk.bf16.vlgmr.msrb.gmra.mxu3 %vm879_vm1, %v2467_v60 }
 0x4f7   :  { %v2278_v10 = vpop.f32.mrf.mxu0 }
 0x4f8   :  { %v2279_v11 = vadd.f32 %v4334_v8, %v2278_v10 }
 0x4fa   :  { %v2836_v13 = vpack.c.bf16 %v2279_v11, %v2279_v11 }
 0x4fc   :  { %v2848_v47 = vsel %vm1251_vm2, %v2836_v13, 0 }
 0x4fd   :  { %v2331_v21 = vpop.f32.mrf.mxu2  ;;  %2857 = vmatpush.bf16.msra.mxu0 %v2848_v47 }
 0x4fe   :  { %v2332_v50 = vadd.f32 %v4335_v14, %v2331_v21 }
 0x4ff   :  { %v2280_v63 = vpop.f32.mrf.mxu0 }
 0x500   :  { %v2838_v15 = vpack.c.bf16 %v2332_v50, %v2332_v50  ;;  %v2306_v17 = vpop.f32.mrf.mxu1 }
 0x501   :  { %v2307_v19 = vadd.f32 %v4336_v62, %v2306_v17 }
 0x502   :  { %v2886_v18 = vsel %vm1251_vm2, %v2838_v15, 0 }
 0x503   :  { %2895 = vmatpush.bf16.msra.mxu2 %v2886_v18  ;;  %v2837_v49 = vpack.c.bf16 %v2307_v19, %v2307_v19 }
 0x505   :  { %v2333_v23 = vpop.f32.mrf.mxu2  ;;  %v2867_v24 = vsel %vm1251_vm2, %v2837_v49, 0 }
 0x506   :  { %v2356_v25 = vpop.f32.mrf.mxu3  ;;  %2876 = vmatpush.bf16.msra.mxu1 %v2867_v24 }
 0x507   :  { %v2381_v26 = vpop.f32.mrf.mxu0  ;;  %v2357_v27 = vadd.f32 %v4337_v20, %v2356_v25 }
 0x508   :  { %v2382_v28 = vadd.f32 %v4338_v22, %v2381_v26  ;;  %v2308_v29 = vpop.f32.mrf.mxu1 }
 0x509   :  { %v2839_v30 = vpack.c.bf16 %v2357_v27, %v2357_v27 }
 0x50a   :  { %v2840_v31 = vpack.c.bf16 %v2382_v28, %v2382_v28 }
 0x50b   :  { %v2905_v59 = vsel %vm1251_vm2, %v2839_v30, 0 }
 0x50c   :  { %v2924_v1 = vsel %vm1251_vm2, %v2840_v31, 0  ;;  %2914 = vmatpush.bf16.msra.mxu3 %v2905_v59 }
 0x50d   :  { %v2431_v34 = vpop.f32.mrf.mxu2  ;;  %2933 = vmatpush.bf16.msrb.mxu0 %v2924_v1 }
 0x50e   :  { %v2432_v35 = vadd.f32 %v4339_v32, %v2431_v34  ;;  %v2358_v37 = vpop.f32.mrf.mxu3 }
 0x50f   :  { %v2383_v38 = vpop.f32.mrf.mxu0 }
 0x510   :  { %v2842_v40 = vpack.c.bf16 %v2432_v35, %v2432_v35  ;;  %v2406_v42 = vpop.f32.mrf.mxu1 }
 0x511   :  { %v2407_v44 = vadd.f32 %v4340_v36, %v2406_v42 }
 0x512   :  { %v2962_v43 = vsel %vm1251_vm2, %v2842_v40, 0 }
 0x513   :  { %2971 = vmatpush.bf16.msrb.mxu2 %v2962_v43  ;;  %v2841_v45 = vpack.c.bf16 %v2407_v44, %v2407_v44 }
 0x515   :  { %v2433_v48 = vpop.f32.mrf.mxu2  ;;  %v2943_v5 = vsel %vm1251_vm2, %v2841_v45, 0 }
 0x516   :  { %v2456_v41 = vpop.f32.mrf.mxu3  ;;  %2952 = vmatpush.bf16.msrb.mxu1 %v2943_v5 }
 0x517   :  { %v2491_v53 = vpop.f32.mrf.mxu0  ;;  %v2457_v55 = vadd.f32 %v4341_v46, %v2456_v41 }
 0x518   :  { %v2628_v4 = vmul.f32 0.35355338, %v2491_v53  ;;  %v2408_v51 = vpop.f32.mrf.mxu1 }
 0x519   :  { %v2843_v57 = vpack.c.bf16 %v2457_v55, %v2457_v55 }
 0x51a   :  { %v2636_v39 = vsel %vm879_vm1, %v2628_v4, -inf }
 0x51b   :  { %2637 = vmax.xlane.f32.xlu1 %v2636_v39  ;;  %v2981_v58 = vsel %vm1251_vm2, %v2843_v57, 0 }
 0x51c   :  { %2990 = vmatpush.bf16.msrb.mxu3 %v2981_v58 }
 0x51d   :  { %v2529_v0 = vpop.f32.mrf.mxu2 }
 0x51e   :  { %v2630_v2 = vmul.f32 0.35355338, %v2529_v0  ;;  %v2458_v3 = vpop.f32.mrf.mxu3 }
 0x51f   :  { %v2493_v52 = vpop.f32.mrf.mxu0 }
 0x520   :  { %v2642_v56 = vsel %vm879_vm1, %v2630_v2, -inf  ;;  %v2510_v6 = vpop.f32.mrf.mxu1 }
 0x521   :  { %2643 = vmax.xlane.f32.xlu2 %v2642_v56  ;;  %v2629_v7 = vmul.f32 0.35355338, %v2510_v6 }
 0x523   :  { %v2639_v8 = vsel %vm879_vm1, %v2629_v7, -inf }
 0x525   :  { %v2531_v9 = vpop.f32.mrf.mxu2 }
 0x526   :  { %v2548_v12 = vpop.f32.mrf.mxu3 }
 0x527   :  { %v2567_v60 = vpop.f32.mrf.mxu0  ;;  %v2631_v61 = vmul.f32 0.35355338, %v2548_v12 }
 0x528   :  { %v2512_v10 = vpop.f32.mrf.mxu1  ;;  %v2632_v13 = vmul.f32 0.35355338, %v2567_v60 }
 0x529   :  { %2640 = vmax.xlane.f32.xlu2 %v2639_v8  ;;  %v2645_v11 = vsel %vm879_vm1, %v2631_v61, -inf }
 0x52a   :  { %2646 = vmax.xlane.f32.xlu0 %v2645_v11  ;;  %v2648_v63 = vsel %vm879_vm1, %v2632_v13, -inf }
 0x52d   :  { %v2605_v14 = vpop.f32.mrf.mxu2 }
 0x52e   :  { %v2634_v47 = vmul.f32 0.35355338, %v2605_v14  ;;  %v2550_v21 = vpop.f32.mrf.mxu3 }
 0x52f   :  { %v2569_v50 = vpop.f32.mrf.mxu0 }
 0x530   :  { %v2654_v62 = vsel %vm879_vm1, %v2634_v47, -inf  ;;  %v2586_v15 = vpop.f32.mrf.mxu1 }
 0x531   :  { %2649 = vmax.xlane.f32.xlu2 %v2648_v63  ;;  %v2633_v18 = vmul.f32 0.35355338, %v2586_v15 }
 0x532   :  { %2655 = vmax.xlane.f32.xlu0 %v2654_v62 }
 0x533   :  { %v2651_v22 = vsel %vm879_vm1, %v2633_v18, -inf }
 0x535   :  { %v2607_v17 = vpop.f32.mrf.mxu2 }
 0x536   :  { %v2624_v19 = vpop.f32.mrf.mxu3 }
 0x537   :  { %v2635_v49 = vmul.f32 0.35355338, %v2624_v19 }
 0x538   :  { %v2588_v20 = vpop.f32.mrf.mxu1 }
 0x539   :  { %v2657_v23 = vsel %vm879_vm1, %v2635_v49, -inf }
 0x53a   :  { %2652 = vmax.xlane.f32.xlu0 %v2651_v22  ;;  %2658 = vmax.xlane.f32.xlu1 %v2657_v23 }
 0x53e   :  { %v2626_v24 = vpop.f32.mrf.mxu3 }
 0x58e   :  { %v2638_v25 = vpop.xlane.xlu1 %2637 }
 0x58f   :  { %v2660_v26 = vsub.f32 %v2628_v4, %v2638_v25 }
 0x591   :  { %v2668_v27 = vmul.f32 1.442695, %v2660_v26 }
 0x593   :  { %4387 = vpow2.f32 %v2668_v27 }
 0x594   :  { %v2644_v28 = vpop.xlane.xlu2 %2643 }
 0x595   :  { %v2662_v29 = vsub.f32 %v2630_v2, %v2644_v28 }
 0x597   :  { %v2672_v30 = vmul.f32 1.442695, %v2662_v29 }
 0x599   :  { %v5354_v31 = vpop.eup %4387  ;;  %4389 = vpow2.f32 %v2672_v30 }
 0x59a   :  { %v2684_v32 = vsel %vm879_vm1, %v5354_v31, 0.0 }
 0x59b   :  { %2685 = vadd.xlane.f32.xlu0 %v2684_v32 }
 0x59c   :  { %v2641_v59 = vpop.xlane.xlu2 %2640 }
 0x59d   :  { %v2661_v1 = vsub.f32 %v2629_v7, %v2641_v59  ;;  %v2647_v34 = vpop.xlane.xlu0 %2646 }
 0x59e   :  { %v2663_v36 = vsub.f32 %v2631_v61, %v2647_v34 }
 0x59f   :  { %v5358_v35 = vpop.eup %4389  ;;  %v2670_v37 = vmul.f32 1.442695, %v2661_v1 }
 0x5a0   :  { %v2690_v38 = vsel %vm879_vm1, %v5358_v35, 0.0  ;;  %v2674_v40 = vmul.f32 1.442695, %v2663_v36 }
 0x5a1   :  { %4391 = vpow2.f32 %v2670_v37  ;;  %2691 = vadd.xlane.f32.xlu1 %v2690_v38 }
 0x5a2   :  { %4393 = vpow2.f32 %v2674_v40 }
 0x5a4   :  { %v2650_v42 = vpop.xlane.xlu2 %2649 }
 0x5a5   :  { %v2664_v43 = vsub.f32 %v2632_v13, %v2650_v42  ;;  %v2656_v44 = vpop.xlane.xlu0 %2655 }
 0x5a6   :  { %v2666_v46 = vsub.f32 %v2634_v47, %v2656_v44 }
 0x5a7   :  { %v5362_v45 = vpop.eup %4391  ;;  %v2676_v48 = vmul.f32 1.442695, %v2664_v43 }
 0x5a8   :  { %v2687_v5 = vsel %vm879_vm1, %v5362_v45, 0.0  ;;  %v5366_v41 = vpop.eup %4393  ;;  %v2680_v53 = vmul.f32 1.442695, %v2666_v46 }
 0x5a9   :  { %4395 = vpow2.f32 %v2676_v48  ;;  %2688 = vadd.xlane.f32.xlu1 %v2687_v5  ;;  %v2693_v55 = vsel %vm879_vm1, %v5366_v41, 0.0 }
 0x5aa   :  { %4397 = vpow2.f32 %v2680_v53  ;;  %2694 = vadd.xlane.f32.xlu2 %v2693_v55 }
 0x5ad   :  { %v2653_v4 = vpop.xlane.xlu0 %2652  ;;  %v2659_v51 = vpop.xlane.xlu1 %2658 }
 0x5ae   :  { %v2665_v39 = vsub.f32 %v2633_v18, %v2653_v4  ;;  %v2667_v58 = vsub.f32 %v2635_v49, %v2659_v51 }
 0x5af   :  { %v5370_v57 = vpop.eup %4395 }
 0x5b0   :  { %v2696_v0 = vsel %vm879_vm1, %v5370_v57, 0.0  ;;  %v5374_v2 = vpop.eup %4397  ;;  %v2678_v3 = vmul.f32 1.442695, %v2665_v39  ;;  %v2682_v52 = vmul.f32 1.442695, %v2667_v58 }
 0x5b1   :  { %2697 = vadd.xlane.f32.xlu1 %v2696_v0  ;;  %v2702_v56 = vsel %vm879_vm1, %v5374_v2, 0.0 }
 0x5b2   :  { %4399 = vpow2.f32 %v2678_v3  ;;  %2703 = vadd.xlane.f32.xlu2 %v2702_v56 }
 0x5b3   :  { %4401 = vpow2.f32 %v2682_v52 }
 0x5b8   :  { %v5378_v6 = vpop.eup %4399 }
 0x5b9   :  { %v5380_v7 = vpop.eup %4401  ;;  %v2699_v9 = vsel %vm879_vm1, %v5378_v6, 0.0 }
 0x5ba   :  { %v2705_v12 = vsel %vm879_vm1, %v5380_v7, 0.0  ;;  %2700 = vadd.xlane.f32.xlu2 %v2699_v9 }
 0x5bb   :  { %2706 = vadd.xlane.f32.xlu0 %v2705_v12 }
 0x60e   :  { %v2686_v60 = vpop.xlane.xlu0 %2685 }
 0x60f   :  { %4403 = vrcp.f32 %v2686_v60  ;;  %v2719_v13 = vand.u32 2147483648, %v2686_v60  ;;  %v2717_v47 = vand.u32 2147483647, %v2686_v60  ;;  %vm2713_vm4 = vweird.f32 %v2686_v60 }
 0x611   :  { %v2720_v15 = vor.u32 1.1754944e-38, %v2719_v13  ;;  %vm2718_vm6 = vcmp.eq.f32.partialorder %v2717_v47, 8.507059e+37 }
 0x614   :  { %v2692_v61 = vpop.xlane.xlu1 %2691 }
 0x615   :  { %v4404_v8 = vpop.eup %4403  ;;  %4405 = vrcp.f32 %v2692_v61  ;;  %v2749_v20 = vand.u32 2147483648, %v2692_v61  ;;  %v2747_v24 = vand.u32 2147483647, %v2692_v61  ;;  %vm2743_vm8 = vweird.f32 %v2692_v61 }
 0x616   :  { %v2709_v10 = vmul.f32 %v4404_v8, %v2686_v60  ;;  %vm2714_vm3 = vweird.f32 %v4404_v8 }
 0x617   :  { %vm2715_vm5 = vmor %vm2713_vm4, %vm2714_vm3  ;;  %v2750_v28 = vor.u32 1.1754944e-38, %v2749_v20  ;;  %vm2748_vm10 = vcmp.eq.f32.partialorder %v2747_v24, 8.507059e+37 }
 0x618   :  { %v2710_v11 = vsub.f32 1.0, %v2709_v10 }
 0x61a   :  { %v2711_v14 = vmul.f32 %v4404_v8, %v2710_v11 }
 0x61b   :  { %v4406_v21 = vpop.eup %4405 }
 0x61c   :  { %v2712_v50 = vadd.f32 %v4404_v8, %v2711_v14  ;;  %v2739_v62 = vmul.f32 %v4406_v21, %v2692_v61  ;;  %v2689_v63 = vpop.xlane.xlu1 %2688  ;;  %vm2744_vm7 = vweird.f32 %v4406_v21 }
 0x61d   :  { %4407 = vrcp.f32 %v2689_v63  ;;  %v2695_v19 = vpop.xlane.xlu2 %2694  ;;  %vm2745_vm9 = vmor %vm2743_vm8, %vm2744_vm7  ;;  %v2732_v38 = vand.u32 2147483647, %v2689_v63  ;;  %v2734_v40 = vand.u32 2147483648, %v2689_v63  ;;  %vm2728_vm12 = vweird.f32 %v2689_v63 }
 0x61e   :  { %v2716_v17 = vsel %vm2715_vm5, %v4404_v8, %v2712_v50  ;;  %v2740_v18 = vsub.f32 1.0, %v2739_v62  ;;  %4409 = vrcp.f32 %v2695_v19  ;;  %v2762_v46 = vand.u32 2147483647, %v2695_v19 }
 0x61f   :  { %v2721_v49 = vsel %vm2718_vm6, %v2720_v15, %v2716_v17  ;;  %v2764_v48 = vand.u32 2147483648, %v2695_v19  ;;  %vm2733_vm15 = vcmp.eq.f32.partialorder %v2732_v38, 8.507059e+37  ;;  %v2735_v55 = vor.u32 1.1754944e-38, %v2734_v40 }
 0x620   :  { %v2722_v22 = vmul.f32 %v5354_v31, %v2721_v49  ;;  %v2741_v23 = vmul.f32 %v4406_v21, %v2740_v18  ;;  %vm2758_vm3 = vweird.f32 %v2695_v19  ;;  %vm2763_vm5 = vcmp.eq.f32.partialorder %v2762_v46, 8.507059e+37 }
 0x621   :  { %v2765_v3 = vor.u32 1.1754944e-38, %v2764_v48 }
 0x622   :  { %v2828_v25 = vpack.c.bf16 %v2722_v22, %v2722_v22  ;;  %v2742_v26 = vadd.f32 %v4406_v21, %v2741_v23 }
 0x623   :  { %v4408_v27 = vpop.eup %4407 }
 0x624   :  { %v2746_v29 = vsel %vm2745_vm9, %v4406_v21, %v2742_v26  ;;  %v2724_v30 = vmul.f32 %v4408_v27, %v2689_v63  ;;  %4111 = vmatmul.msk.bf16.vlgmr.msra.gmra.mxu0 %vm879_vm1, %v2828_v25  ;;  %v5388_v32 = vpop.xlane.xlu1 %2697  ;;  %v4410_v59 = vpop.eup %4409  ;;  %vm2729_vm11 = vweird.f32 %v4408_v27 }
 0x625   :  { %v2751_v1 = vsel %vm2748_vm10, %v2750_v28, %v2746_v29  ;;  %4411 = vrcp.f32 %v5388_v32  ;;  %v2754_v36 = vmul.f32 %v4410_v59, %v2695_v19  ;;  %v5392_v37 = vpop.xlane.xlu2 %2703  ;;  %vm2759_vm13 = vweird.f32 %v4410_v59  ;;  %vm2730_vm14 = vmor %vm2728_vm12, %vm2729_vm11 }
 0x626   :  { %v2752_v31 = vmul.f32 %v5358_v35, %v2751_v1  ;;  %v2725_v34 = vsub.f32 1.0, %v2724_v30  ;;  %4413 = vrcp.f32 %v5392_v37  ;;  %vm2760_vm4 = vmor %vm2758_vm3, %vm2759_vm13  ;;  %v2777_v52 = vand.u32 2147483647, %v5388_v32 }
 0x627   :  { %v2755_v44 = vsub.f32 1.0, %v2754_v36  ;;  %v2779_v10 = vand.u32 2147483648, %v5388_v32  ;;  %vm2773_vm7 = vweird.f32 %v5388_v32  ;;  %v2809_v50 = vand.u32 2147483648, %v5392_v37 }
 0x628   :  { %v2830_v42 = vpack.c.bf16 %v2752_v31, %v2752_v31  ;;  %v2726_v43 = vmul.f32 %v4408_v27, %v2725_v34  ;;  %vm2778_vm10 = vcmp.eq.f32.partialorder %v2777_v52, 8.507059e+37  ;;  %vm2803_vm11 = vweird.f32 %v5392_v37  ;;  %v3008_v52 = vld [vmem:[%s5555_s8 + $0x10] sm:$0xf] }
 0x629   :  { %v2756_v53 = vmul.f32 %v4410_v59, %v2755_v44  ;;  %v2780_v17 = vor.u32 1.1754944e-38, %v2779_v10  ;;  %v2810_v20 = vor.u32 1.1754944e-38, %v2809_v50  ;;  %v3011_v10 = vld [vmem:[%s5555_s8 + $0x1c] sm:$0xf] }
 0x62a   :  { %v2727_v5 = vadd.f32 %v4408_v27, %v2726_v43  ;;  %4113 = vmatmul.msk.bf16.vlgmr.msra.gmra.mxu2 %vm879_vm1, %v2830_v42 }
 0x62b   :  { %v4412_v35 = vpop.eup %4411  ;;  %v2757_v51 = vadd.f32 %v4410_v59, %v2756_v53 }
 0x62c   :  { %v2731_v4 = vsel %vm2730_vm14, %v4408_v27, %v2727_v5  ;;  %v2769_v39 = vmul.f32 %v4412_v35, %v5388_v32  ;;  %v4414_v58 = vpop.eup %4413  ;;  %vm2774_vm6 = vweird.f32 %v4412_v35 }
 0x62d   :  { %v2736_v0 = vsel %vm2733_vm15, %v2735_v55, %v2731_v4  ;;  %v2761_v9 = vsel %vm2760_vm4, %v4410_v59, %v2757_v51  ;;  %v2799_v60 = vmul.f32 %v4414_v58, %v5392_v37  ;;  %v2701_v61 = vpop.xlane.xlu2 %2700  ;;  %vm2804_vm8 = vweird.f32 %v4414_v58  ;;  %vm2775_vm9 = vmor %vm2773_vm7, %vm2774_vm6  ;;  %v3004_v4 = vld [vmem:[%s5555_s8] sm:$0xf] }
 0x62e   :  { %v2737_v56 = vmul.f32 %v5362_v45, %v2736_v0  ;;  %v2770_v12 = vsub.f32 1.0, %v2769_v39  ;;  %v2766_v8 = vsel %vm2763_vm5, %v2765_v3, %v2761_v9  ;;  %v2707_v11 = vpop.xlane.xlu0 %2706  ;;  %4415 = vrcp.f32 %v2701_v61  ;;  %vm2805_vm12 = vmor %vm2803_vm11, %vm2804_vm8  ;;  %v3006_v39 = vld [vmem:[%s5555_s8 + $0x8] sm:$0xf]  ;;  %v3010_v9 = vld [vmem:[%s5555_s8 + $0x18] sm:$0xf] }
 0x62f   :  { %v2767_v14 = vmul.f32 %v5366_v41, %v2766_v8  ;;  %v2800_v21 = vsub.f32 1.0, %v2799_v60  ;;  %v2807_v45 = vand.u32 2147483647, %v5392_v37  ;;  %4417 = vrcp.f32 %v2707_v11  ;;  %v3009_v8 = vld [vmem:[%s5555_s8 + $0x14] sm:$0xf] }
 0x630   :  { %v2829_v13 = vpack.c.bf16 %v2737_v56, %v2737_v56  ;;  %v2771_v47 = vmul.f32 %v4412_v35, %v2770_v12  ;;  %v2794_v1 = vand.u32 2147483648, %v2701_v61  ;;  %v2824_v31 = vand.u32 2147483648, %v2707_v11 }
 0x631   :  { %v2831_v62 = vpack.c.bf16 %v2767_v14, %v2767_v14  ;;  %v2801_v15 = vmul.f32 %v4414_v58, %v2800_v21  ;;  %vm2808_vm13 = vcmp.eq.f32.partialorder %v2807_v45, 8.507059e+37  ;;  %v2792_v36 = vand.u32 2147483647, %v2701_v61 }
 0x632   :  { %v2772_v63 = vadd.f32 %v4412_v35, %v2771_v47  ;;  %4112 = vmatmul.msk.bf16.vlgmr.msra.gmra.mxu1 %vm879_vm1, %v2829_v13  ;;  %v2822_v37 = vand.u32 2147483647, %v2707_v11  ;;  %vm2788_vm3 = vweird.f32 %v2701_v61  ;;  %vm2818_vm4 = vweird.f32 %v2707_v11 }
 0x633   :  { %v2802_v41 = vadd.f32 %v4414_v58, %v2801_v15  ;;  %4114 = vmatmul.msk.bf16.vlgmr.msra.gmra.mxu3 %vm879_vm1, %v2831_v62  ;;  %v2825_v42 = vor.u32 1.1754944e-38, %v2824_v31  ;;  %vm2793_vm7 = vcmp.eq.f32.partialorder %v2792_v36, 8.507059e+37  ;;  %v3016_v51 = vsel %vm1251_vm2, %v3004_v4, 0 }
 0x634   :  { %v2776_v18 = vsel %vm2775_vm9, %v4412_v35, %v2772_v63  ;;  %v4416_v19 = vpop.eup %4415  ;;  %vm2823_vm8 = vcmp.eq.f32.partialorder %v2822_v37, 8.507059e+37  ;;  %3025 = vmatpush.bf16.msra.mxu0 %v3016_v51  ;;  %v3092_v56 = vsel %vm1251_vm2, %v3008_v52, 0  ;;  %v3130_v60 = vsel %vm1251_vm2, %v3010_v9, 0 }
 0x635   :  { %v2781_v49 = vsel %vm2778_vm10, %v2780_v17, %v2776_v18  ;;  %v2806_v23 = vsel %vm2805_vm12, %v4414_v58, %v2802_v41  ;;  %v2784_v24 = vmul.f32 %v4416_v19, %v2701_v61  ;;  %v4418_v25 = vpop.eup %4417  ;;  %vm2789_vm14 = vweird.f32 %v4416_v19  ;;  %v3007_v58 = vld [vmem:[%s5555_s8 + $0xc] sm:$0xf] }
 0x636   :  { %v2782_v22 = vmul.f32 %v5370_v57, %v2781_v49  ;;  %v2811_v26 = vsel %vm2808_vm13, %v2810_v20, %v2806_v23  ;;  %v2814_v29 = vmul.f32 %v4418_v25, %v2707_v11  ;;  %vm2819_vm15 = vweird.f32 %v4418_v25  ;;  %vm2790_vm5 = vmor %vm2788_vm3, %vm2789_vm14 }
 0x637   :  { %v2812_v28 = vmul.f32 %v5374_v2, %v2811_v26  ;;  %v2785_v30 = vsub.f32 1.0, %v2784_v24  ;;  %v2795_v2 = vor.u32 1.1754944e-38, %v2794_v1  ;;  %vm2820_vm6 = vmor %vm2818_vm4, %vm2819_vm15  ;;  %v3073_v3 = vsel %vm1251_vm2, %v3007_v58, 0 }
 0x638   :  { %v2832_v27 = vpack.c.bf16 %v2782_v22, %v2782_v22  ;;  %v2815_v59 = vsub.f32 1.0, %v2814_v29  ;;  %3082 = vmatpush.bf16.msra.mxu3 %v3073_v3  ;;  %v3111_v11 = vsel %vm1251_vm2, %v3009_v8, 0  ;;  %v3149_v13 = vsel %vm1251_vm2, %v3011_v10, 0 }
 0x639   :  { %v2834_v32 = vpack.c.bf16 %v2812_v28, %v2812_v28  ;;  %v2786_v34 = vmul.f32 %v4416_v19, %v2785_v30  ;;  %vm3356_vm13 = vcmask 523264  }
 0x63a   :  { %4115 = vmatmul.msk.bf16.vlgmr.msrb.gmra.mxu0 %vm879_vm1, %v2832_v27  ;;  %v2816_v57 = vmul.f32 %v4418_v25, %v2815_v59 }
 0x63b   :  { %4117 = vmatmul.msk.bf16.vlgmr.msrb.gmra.mxu2 %vm879_vm1, %v2834_v32  ;;  %v2787_v38 = vadd.f32 %v4416_v19, %v2786_v34  ;;  %3101 = vmatpush.bf16.msrb.mxu0 %v3092_v56 }
 0x63c   :  { %v2817_v40 = vadd.f32 %v4418_v25, %v2816_v57 }
 0x63d   :  { %v2791_v43 = vsel %vm2790_vm5, %v4416_v19, %v2787_v38 }
 0x63e   :  { %v2821_v44 = vsel %vm2820_vm6, %v4418_v25, %v2817_v40  ;;  %v2796_v46 = vsel %vm2793_vm7, %v2795_v2, %v2791_v43 }
 0x63f   :  { %v2826_v48 = vsel %vm2823_vm8, %v2825_v42, %v2821_v44  ;;  %v2797_v5 = vmul.f32 %v5378_v6, %v2796_v46  ;;  %v3054_v6 = vsel %vm1251_vm2, %v3006_v39, 0 }
 0x640   :  { %v2827_v53 = vmul.f32 %v5380_v7, %v2826_v48  ;;  %3063 = vmatpush.bf16.msra.mxu2 %v3054_v6  ;;  %v3005_v7 = vld [vmem:[%s5555_s8 + $0x4] sm:$0xf] }
 0x641   :  { %v2833_v35 = vpack.c.bf16 %v2797_v5, %v2797_v5  ;;  %v3035_v0 = vsel %vm1251_vm2, %v3005_v7, 0  ;;  %v4342_v5 = vld [vmem:[%s5556_s9] ss:$0 sm:$0xff] }
 0x642   :  { %v2835_v55 = vpack.c.bf16 %v2827_v53, %v2827_v53  ;;  %3044 = vmatpush.bf16.msra.mxu1 %v3035_v0 }
 0x643   :  { %4116 = vmatmul.msk.bf16.vlgmr.msrb.gmra.mxu1 %vm879_vm1, %v2833_v35 }
 0x644   :  { %4118 = vmatmul.msk.bf16.vlgmr.msrb.gmra.mxu3 %vm879_vm1, %v2835_v55  ;;  %3139 = vmatpush.bf16.msrb.mxu2 %v3130_v60 }
 0x645   :  { %3158 = vmatpush.bf16.msrb.mxu3 %v3149_v13 }
 0x646   :  { %3120 = vmatpush.bf16.msrb.mxu1 %v3111_v11 }
 0x6a1   :  { %v2859_v12 = vpop.f32.mrf.mxu0 }
 0x6a2   :  { %v2996_v61 = vpack.c.bf16 %v2859_v12, %v2859_v12 }
 0x6a4   :  { %4119 = vmatmul.msk.bf16.vlgmr.msra.gmra.mxu0 %vm879_vm1, %v2996_v61 }
 0x6a9   :  { %v2861_v14 = vpop.f32.mrf.mxu0 }
 0x6ad   :  { %v2897_v47 = vpop.f32.mrf.mxu2 }
 0x6ae   :  { %v2998_v21 = vpack.c.bf16 %v2897_v47, %v2897_v47 }
 0x6af   :  { %v2878_v45 = vpop.f32.mrf.mxu1 }
 0x6b0   :  { %v2997_v50 = vpack.c.bf16 %v2878_v45, %v2878_v45  ;;  %4121 = vmatmul.msk.bf16.vlgmr.msra.gmra.mxu2 %vm879_vm1, %v2998_v21 }
 0x6b2   :  { %4120 = vmatmul.msk.bf16.vlgmr.msra.gmra.mxu1 %vm879_vm1, %v2997_v50 }
 0x6b5   :  { %v2899_v62 = vpop.f32.mrf.mxu2 }
 0x6b6   :  { %v2916_v63 = vpop.f32.mrf.mxu3 }
 0x6b7   :  { %v2880_v15 = vpop.f32.mrf.mxu1  ;;  %v2999_v17 = vpack.c.bf16 %v2916_v63, %v2916_v63  ;;  %v2935_v18 = vpop.f32.mrf.mxu0 }
 0x6b8   :  { %v3000_v41 = vpack.c.bf16 %v2935_v18, %v2935_v18  ;;  %v4275_v15 = vld [vmem:[%s5557_s10] sm:$0xff] }
 0x6b9   :  { %4122 = vmatmul.msk.bf16.vlgmr.msra.gmra.mxu3 %vm879_vm1, %v2999_v17 }
 0x6ba   :  { %4123 = vmatmul.msk.bf16.vlgmr.msrb.gmra.mxu0 %vm879_vm1, %v3000_v41  ;;  %v4278_v41 = vld [vmem:[%s5557_s10 + $0x18] sm:$0xff] }
 0x6bb   :  { %3301 = vmatpush.bf16.msra.mxu1 %v4278_v41 }
 0x6be   :  { %v2918_v19 = vpop.f32.mrf.mxu3  ;;  %v2973_v49 = vpop.f32.mrf.mxu2 }
 0x6bf   :  { %v3002_v20 = vpack.c.bf16 %v2973_v49, %v2973_v49  ;;  %v2937_v22 = vpop.f32.mrf.mxu0  ;;  %v4277_v49 = vld [vmem:[%s5557_s10 + $0x10] sm:$0xff] }
 0x6c0   :  { %v2954_v23 = vpop.f32.mrf.mxu1  ;;  %3302 = vmatpush.bf16.msra.mxu1 %v4277_v49 }
 0x6c1   :  { %4125 = vmatmul.msk.bf16.vlgmr.msrb.gmra.mxu2 %vm879_vm1, %v3002_v20  ;;  %v3001_v24 = vpack.c.bf16 %v2954_v23, %v2954_v23  ;;  %v4282_v20 = vld [vmem:[%s5559_s12 + $0x18] sm:$0xff] }
 0x6c2   :  { %3364 = vmatpush.bf16.msra.mxu2 %v4282_v20 }
 0x6c3   :  { %4124 = vmatmul.msk.bf16.vlgmr.msrb.gmra.mxu1 %vm879_vm1, %v3001_v24 }
 0x6c6   :  { %v2975_v25 = vpop.f32.mrf.mxu2 }
 0x6c7   :  { %v2992_v26 = vpop.f32.mrf.mxu3  ;;  %v4281_v25 = vld [vmem:[%s5559_s12 + $0x10] sm:$0xff] }
 0x6c8   :  { %v3003_v27 = vpack.c.bf16 %v2992_v26, %v2992_v26  ;;  %v2956_v28 = vpop.f32.mrf.mxu1  ;;  %3365 = vmatpush.bf16.msra.mxu2 %v4281_v25 }
 0x6ca   :  { %4126 = vmatmul.msk.bf16.vlgmr.msrb.gmra.mxu3 %vm879_vm1, %v3003_v27 }
 0x6cf   :  { %v2994_v29 = vpop.f32.mrf.mxu3 }
 0x721   :  { %v3027_v30 = vpop.f32.mrf.mxu0 }
 0x722   :  { %v3164_v40 = vsel %vm136_vm0, %v3027_v30, 0.0 }
 0x729   :  { %v3029_v32 = vpop.f32.mrf.mxu0 }
 0x72f   :  { %v3046_v59 = vpop.f32.mrf.mxu1 }
 0x730   :  { %v3171_v6 = vsel %vm136_vm0, %v3046_v59, 0.0 }
 0x733   :  { %v3065_v1 = vpop.f32.mrf.mxu2 }
 0x734   :  { %v3165_v37 = vsel %vm136_vm0, %v3065_v1, 0.0  ;;  %v4343_v1 = vld [vmem:[%s5561_s14 + $0x2] ss:$0 sm:$0xff] }
 0x735   :  { %v3166_v43 = vadd.f32 %v3165_v37, %v3164_v40 }
 0x737   :  { %v3048_v31 = vpop.f32.mrf.mxu1  ;;  %v3103_v34 = vpop.f32.mrf.mxu0 }
 0x738   :  { %v3167_v2 = vsel %vm136_vm0, %v3103_v34, 0.0 }
 0x739   :  { %v3168_v44 = vadd.f32 %v3167_v2, %v3166_v43 }
 0x73b   :  { %v3067_v36 = vpop.f32.mrf.mxu2 }
 0x73c   :  { %v3084_v57 = vpop.f32.mrf.mxu3  ;;  %v4344_v36 = vld [vmem:[%s5561_s14 + $0x3] ss:$0 sm:$0xff] }
 0x73d   :  { %v3172_v4 = vsel %vm136_vm0, %v3084_v57, 0.0 }
 0x73e   :  { %v3173_v58 = vadd.f32 %v3172_v4, %v3171_v6  ;;  %v4286_v4 = vld [vmem:[%s5559_s12 + $0x38] sm:$0xff]  ;;  %v4284_v6 = vld [vmem:[%s5559_s12 + $0x28] sm:$0xff] }
 0x73f   :  { %v3105_v38 = vpop.f32.mrf.mxu0  ;;  %3404 = vmatpush.bf16.msra.mxu3 %v4286_v4 }
 0x740   :  { %v3122_v42 = vpop.f32.mrf.mxu1 }
 0x741   :  { %v3174_v7 = vsel %vm136_vm0, %v3122_v42, 0.0 }
 0x742   :  { %v3175_v52 = vadd.f32 %v3174_v7, %v3173_v58  ;;  %v4283_v7 = vld [vmem:[%s5559_s12 + $0x20] sm:$0xff] }
 0x743   :  { %v4345_v58 = vld [vmem:[%s5558_s11] ss:$0 sm:$0xff] }
 0x744   :  { %v3086_v46 = vpop.f32.mrf.mxu3  ;;  %v3141_v48 = vpop.f32.mrf.mxu2 }
 0x745   :  { %v3169_v53 = vsel %vm136_vm0, %v3141_v48, 0.0 }
 0x746   :  { %v3170_v35 = vadd.f32 %v3169_v53, %v3168_v44 }
 0x748   :  { %v3182_v55 = vadd.f32 %v4342_v5, %v3170_v35  ;;  %v3124_v51 = vpop.f32.mrf.mxu1 }
 0x749   :  { %v4279_v51 = vld [vmem:[%s5559_s12] sm:$0xff] }
 0x74a   :  { %v3184_v39 = vadd.f32 %v3182_v55, %v5231_v54  ;;  %v4280_v55 = vld [vmem:[%s5559_s12 + $0x8] sm:$0xff] }
 0x74b   :  { %3366 = vmatpush.bf16.msra.mxu2 %v4280_v55 }
 0x74c   :  { %v3143_v0 = vpop.f32.mrf.mxu2  ;;  %v3188_v3 = vsel %vm136_vm0, %v3184_v39, 0.0 }
 0x74d   :  { %3189 = vadd.xlane.f32.xlu0 %v3188_v3  ;;  %v3160_v56 = vpop.f32.mrf.mxu3 }
 0x74e   :  { %v3176_v9 = vsel %vm136_vm0, %v3160_v56, 0.0 }
 0x74f   :  { %v3177_v12 = vadd.f32 %v3176_v9, %v3175_v52  ;;  %3367 = vmatpush.bf16.msra.mxu2 %v4279_v51 }
 0x751   :  { %v3183_v60 = vadd.f32 %v4342_v5, %v3177_v12 }
 0x753   :  { %v3185_v61 = vadd.f32 %v3183_v60, %v5252_v16  ;;  %v4276_v16 = vld [vmem:[%s5557_s10 + $0x8] sm:$0xff]  ;;  %s4458_s10 = smov 8  }
 0x754   :  { %3273 = vmatpush.bf16.msra.mxu0 %v4276_v16 }
 0x755   :  { %v3162_v8 = vpop.f32.mrf.mxu3  ;;  %v3191_v54 = vsel %vm136_vm0, %v3185_v61, 0.0 }
 0x756   :  { %3192 = vadd.xlane.f32.xlu1 %v3191_v54 }
 0x758   :  { %3274 = vmatpush.bf16.msra.mxu0 %v4275_v15 }
 0x7c0   :  { %v3190_v10 = vpop.xlane.xlu0 %3189 }
 0x7c1   :  { %v3194_v11 = vmul.f32 %v3190_v10, %v5088_v33  ;;  %v4346_v10 = vld [vmem:[%s5560_s13] ss:$0 sm:$0xff] }
 0x7c3   :  { %v3196_v13 = vsub.f32 %v3184_v39, %v3194_v11  ;;  %v4285_v39 = vld [vmem:[%s5559_s12 + $0x30] sm:$0xff] }
 0x7c4   :  { %3405 = vmatpush.bf16.msra.mxu3 %v4285_v39 }
 0x7c5   :  { %v3198_v14 = vmul.f32 %v3196_v13, %v3196_v13 }
 0x7c7   :  { %v3200_v47 = vsel %vm136_vm0, %v3198_v14, 0.0 }
 0x7c8   :  { %3201 = vadd.xlane.f32.xlu2 %v3200_v47  ;;  %3406 = vmatpush.bf16.msra.mxu3 %v4284_v6 }
 0x7c9   :  { %v3193_v21 = vpop.xlane.xlu1 %3192 }
 0x7ca   :  { %v3195_v45 = vmul.f32 %v3193_v21, %v5088_v33 }
 0x7cc   :  { %v3197_v50 = vsub.f32 %v3185_v61, %v3195_v45  ;;  %3407 = vmatpush.bf16.msra.mxu3 %v4283_v7 }
 0x7ce   :  { %v3199_v62 = vmul.f32 %v3197_v50, %v3197_v50 }
 0x7d0   :  { %v3203_v63 = vsel %vm136_vm0, %v3199_v62, 0.0 }
 0x7d1   :  { %3204 = vadd.xlane.f32.xlu0 %v3203_v63 }
 0x83b   :  { %v3202_v17 = vpop.xlane.xlu2 %3201 }
 0x83c   :  { %v3206_v18 = vmul.f32 %v3202_v17, %v5088_v33 }
 0x83e   :  { %v3208_v19 = vadd.f32 1e-05, %v3206_v18 }
 0x840   :  { %4419 = vrsqrt.f32 %v3208_v19  ;;  %vm3216_vm2 = vweird.f32 %v3208_v19 }
 0x844   :  { %v3205_v22 = vpop.xlane.xlu0 %3204 }
 0x845   :  { %v3207_v24 = vmul.f32 %v3205_v22, %v5088_v33 }
 0x846   :  { %v4420_v23 = vpop.eup %4419 }
 0x847   :  { %v3211_v26 = vmul.f32 %v4420_v23, %v3208_v19  ;;  %v3209_v27 = vadd.f32 1e-05, %v3207_v24  ;;  %vm3217_vm1 = vweird.f32 %v4420_v23 }
 0x848   :  { %vm3218_vm9 = vmor %vm3216_vm2, %vm3217_vm1 }
 0x849   :  { %v3212_v28 = vmul.f32 %v4420_v23, %v3211_v26  ;;  %4421 = vrsqrt.f32 %v3209_v27  ;;  %vm3226_vm11 = vweird.f32 %v3209_v27 }
 0x84b   :  { %v3213_v29 = vmul.f32 0.5, %v3212_v28 }
 0x84d   :  { %v3214_v30 = vsub.f32 1.5, %v3213_v29 }
 0x84f   :  { %v3215_v32 = vmul.f32 %v4420_v23, %v3214_v30  ;;  %v4422_v59 = vpop.eup %4421 }
 0x850   :  { %v3221_v34 = vmul.f32 %v4422_v59, %v3209_v27  ;;  %vm3227_vm10 = vweird.f32 %v4422_v59 }
 0x851   :  { %v3219_v31 = vsel %vm3218_vm9, %v4420_v23, %v3215_v32  ;;  %vm3228_vm12 = vmor %vm3226_vm11, %vm3227_vm10 }
 0x852   :  { %v3230_v57 = vmul.f32 %v3219_v31, %v3196_v13  ;;  %v3222_v37 = vmul.f32 %v4422_v59, %v3221_v34 }
 0x854   :  { %v3233_v38 = vmul.f32 %v4343_v1, %v3230_v57  ;;  %v3223_v40 = vmul.f32 0.5, %v3222_v37  ;;  %v4347_v37 = vld [vmem:[%s5561_s14 + $0x4] ss:$0 sm:$0xff] }
 0x856   :  { %v3236_v2 = vadd.f32 %v4344_v36, %v3233_v38  ;;  %v3224_v42 = vsub.f32 1.5, %v3223_v40 }
 0x858   :  { %v3238_v43 = vpack.c.bf16 %v3236_v2, %v3236_v2  ;;  %v3225_v44 = vmul.f32 %v4422_v59, %v3224_v42 }
 0x85a   :  { %4135 = vmatmul.msk.bf16.vlgmr.msra.gmra.mxu0 %vm136_vm0, %v3238_v43  ;;  %v3229_v46 = vsel %vm3228_vm12, %v4422_v59, %v3225_v44 }
 0x85b   :  { %v3231_v48 = vmul.f32 %v3229_v46, %v3197_v50 }
 0x85d   :  { %v3234_v5 = vmul.f32 %v4343_v1, %v3231_v48 }
 0x85f   :  { %v3237_v53 = vadd.f32 %v4344_v36, %v3234_v5 }
 0x861   :  { %v3239_v35 = vpack.c.bf16 %v3237_v53, %v3237_v53 }
 0x863   :  { %4144 = vmatmul.msk.bf16.vlgmr.msra.gmra.mxu1 %vm136_vm0, %v3239_v35 }
 0x8d7   :  { %v3276_v0 = vpop.f32.mrf.mxu0 }
 0x8d8   :  { %v3277_v3 = vadd.f32 %v4345_v58, %v3276_v0 }
 0x8da   :  { %v3308_v52 = vmax.f32 %v3277_v3, 0.0 }
 0x8dc   :  { %v3310_v56 = vpack.c.bf16 %v3308_v52, %v3308_v52 }
 0x8de   :  { %4161 = vmatmul.msk.bf16.vlgmr.msra.gmra.mxu2 %vm3356_vm13, %v3310_v56 }
 0x8df   :  { %v3278_v9 = vpop.f32.mrf.mxu0 }
 0x8e0   :  { %v3304_v12 = vpop.f32.mrf.mxu1 }
 0x8e1   :  { %v3305_v60 = vadd.f32 %v4345_v58, %v3304_v12 }
 0x8e3   :  { %v3309_v61 = vmax.f32 %v3305_v60, 0.0 }
 0x8e5   :  { %v3311_v8 = vpack.c.bf16 %v3309_v61, %v3309_v61 }
 0x8e7   :  { %4178 = vmatmul.msk.bf16.vlgmr.msra.gmra.mxu3 %vm3356_vm13, %v3311_v8 }
 0x8e8   :  { %v3306_v54 = vpop.f32.mrf.mxu1 }
 0x961   :  { %v3369_v11 = vpop.f32.mrf.mxu2 }
 0x962   :  { %v3370_v13 = vadd.f32 %v4346_v10, %v3369_v11 }
 0x964   :  { %v3413_v14 = vadd.f32 %v3370_v13, %v3236_v2 }
 0x966   :  { %v3417_v47 = vsel %vm136_vm0, %v3413_v14, 0.0 }
 0x967   :  { %3418 = vadd.xlane.f32.xlu1 %v3417_v47 }
 0x969   :  { %v3371_v21 = vpop.f32.mrf.mxu2 }
 0x96a   :  { %v3409_v45 = vpop.f32.mrf.mxu3 }
 0x96b   :  { %v3410_v50 = vadd.f32 %v4346_v10, %v3409_v45 }
 0x96d   :  { %v3414_v62 = vadd.f32 %v3410_v50, %v3237_v53 }
 0x96f   :  { %v3420_v63 = vsel %vm136_vm0, %v3414_v62, 0.0 }
 0x970   :  { %3421 = vadd.xlane.f32.xlu2 %v3420_v63 }
 0x972   :  { %v3411_v16 = vpop.f32.mrf.mxu3 }
 0x9da   :  { %v3419_v15 = vpop.xlane.xlu1 %3418 }
 0x9db   :  { %v3423_v17 = vmul.f32 %v3419_v15, %v5088_v33 }
 0x9dd   :  { %v3425_v18 = vsub.f32 %v3413_v14, %v3423_v17 }
 0x9df   :  { %v3427_v41 = vmul.f32 %v3425_v18, %v3425_v18 }
 0x9e1   :  { %v3429_v19 = vsel %vm136_vm0, %v3427_v41, 0.0 }
 0x9e2   :  { %3430 = vadd.xlane.f32.xlu0 %v3429_v19 }
 0x9e3   :  { %v3422_v49 = vpop.xlane.xlu2 %3421 }
 0x9e4   :  { %v3424_v20 = vmul.f32 %v3422_v49, %v5088_v33 }
 0x9e6   :  { %v3426_v22 = vsub.f32 %v3414_v62, %v3424_v20 }
 0x9e8   :  { %v3428_v23 = vmul.f32 %v3426_v22, %v3426_v22 }
 0x9ea   :  { %v3432_v24 = vsel %vm136_vm0, %v3428_v23, 0.0 }
 0x9eb   :  { %3433 = vadd.xlane.f32.xlu1 %v3432_v24 }
 0xa55   :  { %v3431_v25 = vpop.xlane.xlu0 %3430 }
 0xa56   :  { %v3435_v26 = vmul.f32 %v3431_v25, %v5088_v33 }
 0xa58   :  { %v3437_v27 = vadd.f32 1e-05, %v3435_v26 }
 0xa5a   :  { %4423 = vrsqrt.f32 %v3437_v27  ;;  %vm3445_vm15 = vweird.f32 %v3437_v27 }
 0xa5e   :  { %v3434_v28 = vpop.xlane.xlu1 %3433 }
 0xa5f   :  { %v3436_v30 = vmul.f32 %v3434_v28, %v5088_v33  ;;  %v4348_v33 = vld [vmem:[%s5561_s14 + $0x5] ss:$0 sm:$0xff]  ;;  %s4457_s14 = smov 128  }
 0xa60   :  { %v4424_v29 = vpop.eup %4423 }
 0xa61   :  { %v3440_v32 = vmul.f32 %v4424_v29, %v3437_v27  ;;  %v3438_v59 = vadd.f32 1e-05, %v3436_v30  ;;  %vm3446_vm14 = vweird.f32 %v4424_v29 }
 0xa62   :  { %vm3447_vm3 = vmor %vm3445_vm15, %vm3446_vm14 }
 0xa63   :  { %v3441_v1 = vmul.f32 %v4424_v29, %v3440_v32  ;;  %4425 = vrsqrt.f32 %v3438_v59  ;;  %vm3455_vm5 = vweird.f32 %v3438_v59 }
 0xa65   :  { %v3442_v31 = vmul.f32 0.5, %v3441_v1 }
 0xa67   :  { %v3443_v34 = vsub.f32 1.5, %v3442_v31 }
 0xa69   :  { %v3444_v36 = vmul.f32 %v4424_v29, %v3443_v34  ;;  %v4426_v57 = vpop.eup %4425 }
 0xa6a   :  { %v3450_v40 = vmul.f32 %v4426_v57, %v3438_v59  ;;  %vm3456_vm4 = vweird.f32 %v4426_v57 }
 0xa6b   :  { %v3448_v38 = vsel %vm3447_vm3, %v4424_v29, %v3444_v36  ;;  %vm3457_vm6 = vmor %vm3455_vm5, %vm3456_vm4 }
 0xa6c   :  { %v3459_v2 = vmul.f32 %v3448_v38, %v3425_v18  ;;  %v3451_v42 = vmul.f32 %v4426_v57, %v3450_v40 }
 0xa6e   :  { %v3462_v43 = vmul.f32 %v4347_v37, %v3459_v2  ;;  %v3452_v44 = vmul.f32 0.5, %v3451_v42 }
 0xa70   :  { %v3465_v46 = vadd.f32 %v4348_v33, %v3462_v43  ;;  %v3453_v48 = vsub.f32 1.5, %v3452_v44 }
 0xa72   :  { %3467 = vst.msk [vmem:[#allocation2] sm:$0xff] %vm136_vm0, %v3465_v46  ;;  %v3454_v5 = vmul.f32 %v4426_v57, %v3453_v48 }
 0xa74   :  { %v3458_v53 = vsel %vm3457_vm6, %v4426_v57, %v3454_v5 }
 0xa75   :  { %v3460_v35 = vmul.f32 %v3458_v53, %v3426_v22 }
 0xa77   :  { %v3463_v55 = vmul.f32 %v4347_v37, %v3460_v35 }
 0xa79   :  { %v3466_v4 = vadd.f32 %v4348_v33, %v3463_v55 }
 0xa7b   :  { %3468 = vst.msk [vmem:[#allocation2 + $0x8] sm:$0xff] %vm136_vm0, %v3466_v4 }
 0xa7c   :  { %3481 = dma.vmem_to_hbm [thread:$0]  %s3474_s16, 256, %s3476_s18, [#allocation3], %s4457_s14, %s4457_s14, %s4458_s10  }
 0xa7d   :  { %4453 = dma.done.wait [#allocation3], 256  }
 0xa7e   :  { %4454 = vsyncadd [#allocation3], 4294967040 }
 0xa7f   :  { %3486 = vsyncpa [#allocation3], 1 }

</bundles_post_ra>
